<compile_context>
chip_gen: v7x
topology: tpu7x:2x2x1
jax: 0.10.0
libtpu: 0.0.40
codegen_flags: <defaults>
</compile_context>

<pallas_src>
import functools

import jax
import jax.numpy as jnp
from jax.experimental import pallas as pl
from jax.experimental.pallas import tpu as pltpu

IN_F = 784
H1 = 128
H2 = 64
N_CLS = 10
N_CLS_PAD = 128     # lane-dense logits / stores, full-width 3rd matmul
NEG_BIG = -1e30     # padded-class bias -> exp(pad - max) == 0 in f32 softmax


def mlp_kernel(x_ref, w1_ref, b1_ref, w2_ref, b2_ref, w3_ref, b3_ref, out_ref):
    # One (TM, 784) f32 batch tile streamed from HBM; all weights live in VMEM
    # across grid steps (constant index_maps). f32->bf16 cast is VPU work that
    # hides under the x-tile DMA.
    x = x_ref[...].astype(jnp.bfloat16)                              # (TM, 784) bf16

    h1 = jnp.dot(x, w1_ref[...], preferred_element_type=jnp.float32) + b1_ref[...]
    h1 = jnp.maximum(h1, 0.0).astype(jnp.bfloat16)                   # (TM, 128)

    h2 = jnp.dot(h1, w2_ref[...], preferred_element_type=jnp.float32) + b2_ref[...]
    h2 = jnp.maximum(h2, 0.0).astype(jnp.bfloat16)                   # (TM, 64)

    logits = jnp.dot(h2, w3_ref[...], preferred_element_type=jnp.float32) + b3_ref[...]
    # (TM, 128) f32: last 118 columns carry bias -1e30 -> contribute exactly 0.

    m = jnp.max(logits, axis=1, keepdims=True)
    e = jnp.exp(logits - m)
    denom = jnp.sum(e, axis=1, keepdims=True)
    out_ref[...] = (e * pl.reciprocal(denom, approx=True)).astype(out_ref.dtype)


def prepare_kernel_params(params_f32):
    """One-time pad + cast of the f32 (in, out)-layout params for the kernel.

    Hoist this OUT of the per-call path: call it once when parameters are
    created/updated and pass the prepared tuple to net_forward.

    w1: (784, 128)                              bf16 (no feature padding)
    w2: (128, 64)                               bf16
    w3: (64, 10)  -> (64, 128) zero-padded cols bf16
    b3: (1, 10)   -> (1, 128) padded cols=-1e30 f32
    """
    w1, b1, w2, b2, w3, b3 = params_f32
    w3p = jnp.pad(w3, ((0, 0), (0, N_CLS_PAD - N_CLS))).astype(jnp.bfloat16)
    b3p = jnp.pad(b3, ((0, 0), (0, N_CLS_PAD - N_CLS)), constant_values=NEG_BIG)
    return (w1.astype(jnp.bfloat16), b1.astype(jnp.float32),
            w2.astype(jnp.bfloat16), b2.astype(jnp.float32),
            w3p, b3p.astype(jnp.float32))


def _round_up(n, m):
    return ((n + m - 1) // m) * m


@functools.partial(jax.jit, static_argnames=("tm",))
def net_forward(x, prepared_params, *, tm=1024):
    """x: (B, 784) f32, prepared_params from prepare_kernel_params.
    Returns (B, 10) f32 softmax probabilities (rows sum to 1 to ~1e-3).

    tm = rows per grid step (sweep 512-2048). v7x: keep tm <= ~2048 and ensure
    ceil(B/tm) >= 2 so both TensorCores get work; v5e: tm <= ~1024 at the 16 MiB
    default scoped VMEM (we raise vmem_limit_bytes anyway).
    """
    w1, b1, w2, b2, w3, b3 = prepared_params

    B = x.shape[0]
    # Clamp the tile so small batches aren't padded to a full tm-row tile; the
    # second-to-last block dim must be a multiple of 8 (or the full dim).
    tm_eff = min(tm, _round_up(B, 8))
    n_tiles = pl.cdiv(B, tm_eff)
    Bp = n_tiles * tm_eff
    # Keep an explicit (rows-only) batch pad so padded rows are finite zeros,
    # not undefined data from a masked out-of-bounds last block.
    xp = x if Bp == B else jnp.pad(x, ((0, Bp - B), (0, 0)))

    full = lambda a: pl.BlockSpec(a.shape, lambda i: (0, 0))  # VMEM-resident weights

    flops = 2 * Bp * (IN_F * H1 + H1 * H2 + H2 * N_CLS_PAD)
    bytes_accessed = (Bp * IN_F * 4                                # f32 x
                      + (w1.size + w2.size + w3.size) * 2          # bf16 weights
                      + (b1.size + b2.size + b3.size) * 4          # f32 biases
                      + Bp * N_CLS_PAD * 2)                        # bf16 out

    # Per-step VMEM budget: double-buffered f32 x tile + bf16 out tile, plus
    # ~0.25 MB of resident weights and a handful of f32 (tm,128) intermediates.
    vmem_bytes = (2 * tm_eff * (IN_F * 4 + N_CLS_PAD * 2)
                  + 8 * tm_eff * N_CLS_PAD * 4
                  + (4 << 20))
    vmem_limit = int(min(max(vmem_bytes, 16 << 20), 64 << 20))

    out = pl.pallas_call(
        mlp_kernel,
        out_shape=jax.ShapeDtypeStruct((Bp, N_CLS_PAD), jnp.bfloat16),
        grid=(n_tiles,),
        in_specs=[
            pl.BlockSpec((tm_eff, IN_F), lambda i: (i, 0)),        # raw f32 x tile
            full(w1), full(b1), full(w2), full(b2), full(w3), full(b3),
        ],
        out_specs=pl.BlockSpec((tm_eff, N_CLS_PAD), lambda i: (i, 0)),
        compiler_params=pltpu.CompilerParams(
            dimension_semantics=("parallel",),                     # megacore on v7x
            vmem_limit_bytes=vmem_limit),
        cost_estimate=pl.CostEstimate(
            flops=flops,
            transcendentals=Bp * N_CLS_PAD,
            bytes_accessed=bytes_accessed),
    )(xp, w1, b1, w2, b2, w3, b3)

    return out[:B, :N_CLS].astype(jnp.float32)


def init_params(key):
    """PyTorch nn.Linear-style init: U(-1/sqrt(fan_in), 1/sqrt(fan_in)).
    Weights stored transposed to (in, out), f32, unpadded."""
    dims = [(IN_F, H1), (H1, H2), (H2, N_CLS)]
    params = []
    for fan_in, fan_out in dims:
        key, kw, kb = jax.random.split(key, 3)
        bound = 1.0 / jnp.sqrt(fan_in)
        w = jax.random.uniform(kw, (fan_in, fan_out), jnp.float32, -bound, bound)
        b = jax.random.uniform(kb, (1, fan_out), jnp.float32, -bound, bound)
        params += [w, b]
    return tuple(params)


def reference_forward(x, params_f32):
    w1, b1, w2, b2, w3, b3 = params_f32
    h1 = jnp.maximum(x @ w1 + b1, 0.0)
    h2 = jnp.maximum(h1 @ w2 + b2, 0.0)
    logits = h2 @ w3 + b3
    return jax.nn.softmax(logits, axis=1)


if __name__ == "__main__":
    key = jax.random.PRNGKey(0)
    key, kx = jax.random.split(key)

    B = 200  # not a multiple of 128: exercises batch padding and (at tm=128) a 2-step grid
    x = jax.random.normal(kx, (B, IN_F), jnp.float32)
    params = init_params(key)
    kparams = prepare_kernel_params(params)   # hoisted: weight pad/cast done once

    ref = reference_forward(x, params)

    # Small-tile path: 2-step grid + batch pad.
    out_small = jax.block_until_ready(net_forward(x, kparams, tm=128))
    # Default large-tile path: tm clamps to the (rounded) batch -> single tile.
    out_big = jax.block_until_ready(net_forward(x, kparams))

    for out in (out_small, out_big):
        assert out.shape == (B, N_CLS)
        # approx-reciprocal + bf16 output: rows sum to 1 within ~1e-2
        assert jnp.allclose(jnp.sum(out, axis=1), 1.0, atol=1e-2)
        # bf16 weight/activation/output path vs f32 reference: loose tolerance
        assert jnp.allclose(out, ref, atol=2e-2, rtol=2e-2)
    print("KERNEL_OK")
</pallas_src>

<mosaic_0001>
module attributes {stable_mosaic.version = 11 : i64} {
  func.func @mlp_kernel(%arg0: i32, %arg1: memref<128x784xf32, #tpu.memory_space<vmem>>, %arg2: memref<784x128xbf16, #tpu.memory_space<vmem>>, %arg3: memref<1x128xf32, #tpu.memory_space<vmem>>, %arg4: memref<128x64xbf16, #tpu.memory_space<vmem>>, %arg5: memref<1x64xf32, #tpu.memory_space<vmem>>, %arg6: memref<64x128xbf16, #tpu.memory_space<vmem>>, %arg7: memref<1x128xf32, #tpu.memory_space<vmem>>, %arg8: memref<128x128xbf16, #tpu.memory_space<vmem>>) attributes {dimension_semantics = [#tpu.dimension_semantics<parallel>], iteration_bounds = array<i64: 2>, scalar_prefetch = 0 : i64, scratch_operands = 0 : i64, tpu.core_type = #tpu.core_type<tc>, window_params = [{transform_indices = @transform_0, window_bounds = array<i64: 128, 784>}, {pipeline_mode = #tpu.pipeline_mode<synchronous>, transform_indices = @transform_1, window_bounds = array<i64: 784, 128>}, {pipeline_mode = #tpu.pipeline_mode<synchronous>, transform_indices = @transform_2, window_bounds = array<i64: 1, 128>}, {pipeline_mode = #tpu.pipeline_mode<synchronous>, transform_indices = @transform_3, window_bounds = array<i64: 128, 64>}, {pipeline_mode = #tpu.pipeline_mode<synchronous>, transform_indices = @transform_4, window_bounds = array<i64: 1, 64>}, {pipeline_mode = #tpu.pipeline_mode<synchronous>, transform_indices = @transform_5, window_bounds = array<i64: 64, 128>}, {pipeline_mode = #tpu.pipeline_mode<synchronous>, transform_indices = @transform_6, window_bounds = array<i64: 1, 128>}, {transform_indices = @transform_7, window_bounds = array<i64: 128, 128>}]} {
    %c0 = arith.constant 0 : index
    %c0_0 = arith.constant 0 : index
    %0 = vector.load %arg1[%c0, %c0_0] : memref<128x784xf32, #tpu.memory_space<vmem>>, vector<128x784xf32>
    %1 = arith.truncf %0 : vector<128x784xf32> to vector<128x784xbf16>
    %c0_1 = arith.constant 0 : index
    %c0_2 = arith.constant 0 : index
    %2 = vector.load %arg2[%c0_1, %c0_2] : memref<784x128xbf16, #tpu.memory_space<vmem>>, vector<784x128xbf16>
    %cst = arith.constant dense<0.000000e+00> : vector<128x128xf32>
    %3 = tpu.matmul %1, %2, %cst {dimension_numbers = #tpu.dot_dimension_numbers<[1], [0], [0], [1], [0, 0, 1, 1], [], []>} : vector<128x784xbf16>, vector<784x128xbf16>, vector<128x128xf32> -> vector<128x128xf32>
    %c0_3 = arith.constant 0 : index
    %c0_4 = arith.constant 0 : index
    %4 = vector.load %arg3[%c0_3, %c0_4] : memref<1x128xf32, #tpu.memory_space<vmem>>, vector<1x128xf32>
    %5 = vector.broadcast %4 : vector<1x128xf32> to vector<128x128xf32>
    %6 = arith.addf %3, %5 : vector<128x128xf32>
    %cst_5 = arith.constant 0.000000e+00 : f32
    %7 = vector.broadcast %cst_5 : f32 to vector<128x128xf32>
    %8 = arith.maximumf %6, %7 : vector<128x128xf32>
    %9 = arith.truncf %8 : vector<128x128xf32> to vector<128x128xbf16>
    %c0_6 = arith.constant 0 : index
    %c0_7 = arith.constant 0 : index
    %10 = vector.load %arg4[%c0_6, %c0_7] : memref<128x64xbf16, #tpu.memory_space<vmem>>, vector<128x64xbf16>
    %cst_8 = arith.constant dense<0.000000e+00> : vector<128x64xf32>
    %11 = tpu.matmul %9, %10, %cst_8 {dimension_numbers = #tpu.dot_dimension_numbers<[1], [0], [0], [1], [0, 0, 1, 1], [], []>} : vector<128x128xbf16>, vector<128x64xbf16>, vector<128x64xf32> -> vector<128x64xf32>
    %c0_9 = arith.constant 0 : index
    %c0_10 = arith.constant 0 : index
    %12 = vector.load %arg5[%c0_9, %c0_10] : memref<1x64xf32, #tpu.memory_space<vmem>>, vector<1x64xf32>
    %13 = vector.broadcast %12 : vector<1x64xf32> to vector<128x64xf32>
    %14 = arith.addf %11, %13 : vector<128x64xf32>
    %cst_11 = arith.constant 0.000000e+00 : f32
    %15 = vector.broadcast %cst_11 : f32 to vector<128x64xf32>
    %16 = arith.maximumf %14, %15 : vector<128x64xf32>
    %17 = arith.truncf %16 : vector<128x64xf32> to vector<128x64xbf16>
    %c0_12 = arith.constant 0 : index
    %c0_13 = arith.constant 0 : index
    %18 = vector.load %arg6[%c0_12, %c0_13] : memref<64x128xbf16, #tpu.memory_space<vmem>>, vector<64x128xbf16>
    %cst_14 = arith.constant dense<0.000000e+00> : vector<128x128xf32>
    %19 = tpu.matmul %17, %18, %cst_14 {dimension_numbers = #tpu.dot_dimension_numbers<[1], [0], [0], [1], [0, 0, 1, 1], [], []>} : vector<128x64xbf16>, vector<64x128xbf16>, vector<128x128xf32> -> vector<128x128xf32>
    %c0_15 = arith.constant 0 : index
    %c0_16 = arith.constant 0 : index
    %20 = vector.load %arg7[%c0_15, %c0_16] : memref<1x128xf32, #tpu.memory_space<vmem>>, vector<1x128xf32>
    %21 = vector.broadcast %20 : vector<1x128xf32> to vector<128x128xf32>
    %22 = arith.addf %19, %21 : vector<128x128xf32>
    %cst_17 = arith.constant dense<0xFF800000> : vector<128xf32>
    %23 = vector.multi_reduction <maximumf>, %22, %cst_17 [1] : vector<128x128xf32> to vector<128xf32>
    %24 = vector.shape_cast %23 : vector<128xf32> to vector<128x1xf32>
    %25 = vector.broadcast %24 : vector<128x1xf32> to vector<128x128xf32>
    %26 = arith.subf %22, %25 : vector<128x128xf32>
    %27 = math.exp %26 : vector<128x128xf32>
    %cst_18 = arith.constant dense<0.000000e+00> : vector<128xf32>
    %28 = vector.multi_reduction <add>, %27, %cst_18 [1] : vector<128x128xf32> to vector<128xf32>
    %29 = vector.shape_cast %28 : vector<128xf32> to vector<128x1xf32>
    %30 = tpu.reciprocal %29 {approx = true} : vector<128x1xf32> -> vector<128x1xf32>
    %31 = vector.broadcast %30 : vector<128x1xf32> to vector<128x128xf32>
    %32 = arith.mulf %27, %31 : vector<128x128xf32>
    %33 = arith.truncf %32 : vector<128x128xf32> to vector<128x128xbf16>
    %c0_19 = arith.constant 0 : index
    %c0_20 = arith.constant 0 : index
    %34 = vector.load %arg8[%c0_19, %c0_20] : memref<128x128xbf16, #tpu.memory_space<vmem>>, vector<128x128xbf16>
    tpu.vector_store %arg8[%c0_19, %c0_20], %33 {strides = array<i32>} : memref<128x128xbf16, #tpu.memory_space<vmem>>, vector<128x128xbf16>,
    return
  }
  func.func @transform_0(%arg0: i32) -> (i32, i32) {
    %c0_i32 = arith.constant 0 : i32
    %c0_i32_0 = arith.constant 0 : i32
    return %arg0, %c0_i32 : i32, i32
  }
  func.func @transform_1(%arg0: i32) -> (i32, i32) {
    %c0_i32 = arith.constant 0 : i32
    %c0_i32_0 = arith.constant 0 : i32
    %c0_i32_1 = arith.constant 0 : i32
    return %c0_i32, %c0_i32_0 : i32, i32
  }
  func.func @transform_2(%arg0: i32) -> (i32, i32) {
    %c0_i32 = arith.constant 0 : i32
    %c0_i32_0 = arith.constant 0 : i32
    %c0_i32_1 = arith.constant 0 : i32
    return %c0_i32, %c0_i32_0 : i32, i32
  }
  func.func @transform_3(%arg0: i32) -> (i32, i32) {
    %c0_i32 = arith.constant 0 : i32
    %c0_i32_0 = arith.constant 0 : i32
    %c0_i32_1 = arith.constant 0 : i32
    return %c0_i32, %c0_i32_0 : i32, i32
  }
  func.func @transform_4(%arg0: i32) -> (i32, i32) {
    %c0_i32 = arith.constant 0 : i32
    %c0_i32_0 = arith.constant 0 : i32
    %c0_i32_1 = arith.constant 0 : i32
    return %c0_i32, %c0_i32_0 : i32, i32
  }
  func.func @transform_5(%arg0: i32) -> (i32, i32) {
    %c0_i32 = arith.constant 0 : i32
    %c0_i32_0 = arith.constant 0 : i32
    %c0_i32_1 = arith.constant 0 : i32
    return %c0_i32, %c0_i32_0 : i32, i32
  }
  func.func @transform_6(%arg0: i32) -> (i32, i32) {
    %c0_i32 = arith.constant 0 : i32
    %c0_i32_0 = arith.constant 0 : i32
    %c0_i32_1 = arith.constant 0 : i32
    return %c0_i32, %c0_i32_0 : i32, i32
  }
  func.func @transform_7(%arg0: i32) -> (i32, i32) {
    %c0_i32 = arith.constant 0 : i32
    %c0_i32_0 = arith.constant 0 : i32
    return %arg0, %c0_i32 : i32, i32
  }
}

</mosaic_0001>

<bundles_post_ra>
// kernel: net_forward.1
= control target key start
LH: loop header
LB: loop body
LE: loop exit
PB: predicated region body
PF: predicated region fallthrough
CT: control target
= control target key end

     0   :  { %s2594_s24 = smov 0   ;;  %s3111_s0 = inlined_call_operand.vmem [shape: f32[256,784], index: 0, kind: input, shape index: {}]   ;;  %s3112_s1 = inlined_call_operand.vmem [shape: bf16[784,128], index: 1, kind: input, shape index: {}]   ;;  %s3113_s2 = inlined_call_operand.vmem [shape: f32[1,128], index: 2, kind: input, shape index: {}]   ;;  %s3114_s3 = inlined_call_operand.vmem [shape: bf16[128,64], index: 3, kind: input, shape index: {}]   ;;  %s3115_s4 = inlined_call_operand.vmem [shape: f32[1,64], index: 4, kind: input, shape index: {}]   ;;  %s3116_s5 = inlined_call_operand.vmem [shape: bf16[64,128], index: 5, kind: input, shape index: {}]   ;;  %s3117_s6 = inlined_call_operand.vmem [shape: f32[1,128], index: 6, kind: input, shape index: {}]   ;;  %s3118_s7 = inlined_call_operand.vmem [shape: bf16[256,128], index: 7, kind: output, shape index: {}]  }
   0x1 LB: > { %s1923_s25 = sadd.s32 4294967295, %s2552_s24   ;;  %p1927_p0 = scmp.ge.s32.totalorder %s2552_s24, 1  ;;  %s2552_s24 = sphi %s2594_s24, %s17_s24  }
   0x2   : > { %p239_p1 = scmp.lt.s32.totalorder %s2552_s24, 3 }
   0x4   : > { %p240_p2 = pnand %p1927_p0, %p239_p1 }
   0x5   : > { %v2421_v0 = vld [vmem:[%s3112_s1 + $0x40] sm:$0xff] (!%p240_p2)   ;;  %v2425_v4 = vld [vmem:[%s3112_s1 + $0x48] sm:$0xff] (!%p240_p2)   ;;  %v2429_v8 = vld [vmem:[%s3112_s1 + $0x50] sm:$0xff] (!%p240_p2)   ;;  %s1928_s12 = sshll.u32 (!%p240_p2), %s1923_s25, 4  ;;  %vm853_vm0 = vcmask (!%p240_p2), 130048   ;;  %vm1521_vm1 = vcmask (!%p240_p2), 523264  }
   0x6   : > { %243 = sbr.rel (%p240_p2) target bundleno = 1134 (0x46e), region = 48  ;;  %v2422_v1 = vld [vmem:[%s3112_s1 + $0xc0] sm:$0xff] (!%p240_p2)   ;;  %2093 = vmatprep.subr.bf16.mxu0 (!%p240_p2), %v2421_v0  ;;  %v2426_v5 = vld [vmem:[%s3112_s1 + $0xc8] sm:$0xff] (!%p240_p2)   ;;  %v2430_v9 = vld [vmem:[%s3112_s1 + $0xd0] sm:$0xff] (!%p240_p2)   ;;  %p273_p3 = scmp.lt.s32.totalorder (!%p240_p2), %s1928_s12, 31 }
   0x7   : > { %v2423_v2 = vld [vmem:[%s3112_s1] sm:$0xff] (!%p240_p2)   ;;  %2157 = vmatprep.subr.bf16.mxu1 (!%p240_p2), %v2422_v1  ;;  %v2427_v6 = vld [vmem:[%s3112_s1 + $0x8] sm:$0xff] (!%p240_p2)   ;;  %v2431_v10 = vld [vmem:[%s3112_s1 + $0x10] sm:$0xff] (!%p240_p2)  }
   0x8   : > { %v2424_v3 = vld [vmem:[%s3112_s1 + $0x80] sm:$0xff] (!%p240_p2)   ;;  %2094 = vmatpush3.bf16.msra.mxu0 (!%p240_p2), %v2423_v2  ;;  %v2428_v7 = vld [vmem:[%s3112_s1 + $0x88] sm:$0xff] (!%p240_p2)   ;;  %v2432_v11 = vld [vmem:[%s3112_s1 + $0x90] sm:$0xff] (!%p240_p2)  }
   0x9   : > { %2158 = vmatpush3.bf16.msra.mxu1 (!%p240_p2), %v2424_v3  ;;  %2095 = vmatprep.subr.bf16.mxu0 (!%p240_p2), %v2425_v4  ;;  %v2433_v12 = vld [vmem:[%s3112_s1 + $0x58] sm:$0xff] (!%p240_p2)   ;;  %v2437_v16 = vld [vmem:[%s3112_s1 + $0x60] sm:$0xff] (!%p240_p2)   ;;  %v2441_v20 = vld [vmem:[%s3112_s1 + $0x68] sm:$0xff] (!%p240_p2)  }
   0xa   : > { %2159 = vmatprep.subr.bf16.mxu1 (!%p240_p2), %v2426_v5  ;;  %v2434_v13 = vld [vmem:[%s3112_s1 + $0xd8] sm:$0xff] (!%p240_p2)   ;;  %v2438_v17 = vld [vmem:[%s3112_s1 + $0xe0] sm:$0xff] (!%p240_p2)   ;;  %v2442_v21 = vld [vmem:[%s3112_s1 + $0xe8] sm:$0xff] (!%p240_p2)  }
   0xb   : > { %v2435_v14 = vld [vmem:[%s3112_s1 + $0x18] sm:$0xff] (!%p240_p2)   ;;  %v2439_v18 = vld [vmem:[%s3112_s1 + $0x20] sm:$0xff] (!%p240_p2)   ;;  %v2443_v22 = vld [vmem:[%s3112_s1 + $0x28] sm:$0xff] (!%p240_p2)  }
   0xc   : > { %2096 = vmatpush3.bf16.msra.mxu0 (!%p240_p2), %v2427_v6  ;;  %v2436_v15 = vld [vmem:[%s3112_s1 + $0x98] sm:$0xff] (!%p240_p2)   ;;  %v2440_v19 = vld [vmem:[%s3112_s1 + $0xa0] sm:$0xff] (!%p240_p2)   ;;  %v2444_v23 = vld [vmem:[%s3112_s1 + $0xa8] sm:$0xff] (!%p240_p2)  }
   0xd   : > { %2160 = vmatpush3.bf16.msra.mxu1 %v2428_v7  ;;  %2097 = vmatprep.subr.bf16.mxu0 %v2429_v8  ;;  %s3120_s12 = smov (!%p273_p3, %s1928_s12), 31  ;;  %v2445_v24 = vld [vmem:[%s3112_s1 + $0x70] sm:$0xff]   ;;  %v2449_v28 = vld [vmem:[%s3112_s1 + $0x78] sm:$0xff]   ;;  %v2453_v44 = vld [vmem:[%s3112_s1 + $0x140] sm:$0xff]  }
   0xe   : > { %2161 = vmatprep.subr.bf16.mxu1 %v2430_v9  ;;  %v2446_v25 = vld [vmem:[%s3112_s1 + $0xf0] sm:$0xff]   ;;  %s2412_s14 = smul.u32 56, %s3120_s12  ;;  %v2450_v29 = vld [vmem:[%s3112_s1 + $0xf8] sm:$0xff]   ;;  %v2454_v45 = vld [vmem:[%s3112_s1 + $0x100] sm:$0xff]   ;;  %s1931_s10 = sshll.u32 %s3120_s12, 2 }
   0xf   : > { %v2447_v26 = vld [vmem:[%s3112_s1 + $0x30] sm:$0xff]   ;;  %v2451_v30 = vld [vmem:[%s3112_s1 + $0x38] sm:$0xff]   ;;  %v2455_v57 = vld [vmem:[%s3112_s1 + $0x148] sm:$0xff]  }
  0x10   : > { %2098 = vmatpush3.bf16.msra.mxu0 %v2431_v10  ;;  %v2448_v27 = vld [vmem:[%s3112_s1 + $0xb0] sm:$0xff]   ;;  %s2700_s26 = scalar_lea.vmem %s3111_s0, %s2412_s14  ;;  %v2452_v31 = vld [vmem:[%s3112_s1 + $0xb8] sm:$0xff]   ;;  %v2456_v59 = vld [vmem:[%s3112_s1 + $0x108] sm:$0xff]   ;;  %s3084_s14 = scalar_lea.vmem %s3118_s7, %s1931_s10 }
  0x11   : > { %2162 = vmatpush3.bf16.msra.mxu1 %v2432_v11  ;;  %2099 = vmatprep.subr.bf16.mxu0 %v2433_v12  ;;  %v287_v32 = vld [vmem:[%s2700_s26 + $0x8] sm:$0xff]  ;;  %v294_v33 = vld [vmem:[%s2700_s26 + $0x40] sm:$0xff]  ;;  %v289_v34 = vld [vmem:[%s2700_s26 + $0x18] sm:$0xff] }
  0x12   : > { %2163 = vmatprep.subr.bf16.mxu1 %v2434_v13  ;;  %v399_v35 = vpack.c.bf16 %v294_v33, %v287_v32  ;;  %v296_v36 = vld [vmem:[%s2700_s26 + $0x50] sm:$0xff]  ;;  %v286_v37 = vld [vmem:[%s2700_s26] sm:$0xff]  ;;  %v293_v38 = vld [vmem:[%s2700_s26 + $0x38] sm:$0xff] }
  0x13   : > { %v401_v39 = vpack.c.bf16 %v296_v36, %v289_v34  ;;  %v398_v40 = vpack.c.bf16 %v293_v38, %v286_v37  ;;  %v288_v41 = vld [vmem:[%s2700_s26 + $0x10] sm:$0xff]  ;;  %v295_v42 = vld [vmem:[%s2700_s26 + $0x48] sm:$0xff]  ;;  %v301_v46 = vld [vmem:[%s2700_s26 + $0x78] sm:$0xff] }
  0x14   : > { %2100 = vmatpush3.bf16.msra.mxu0 %v2435_v14  ;;  %910 = vmatprep.mubr.bf16.mxu0 %v399_v35  ;;  %v400_v43 = vpack.c.bf16 %v295_v42, %v288_v41  ;;  %v308_v47 = vld [vmem:[%s2700_s26 + $0xb0] sm:$0xff]  ;;  %v303_v48 = vld [vmem:[%s2700_s26 + $0x88] sm:$0xff]  ;;  %v310_v49 = vld [vmem:[%s2700_s26 + $0xc0] sm:$0xff] }
  0x15   : > { %2164 = vmatpush3.bf16.msra.mxu1 %v2436_v15  ;;  %2101 = vmatprep.subr.bf16.mxu0 %v2437_v16  ;;  %v406_v50 = vpack.c.bf16 %v308_v47, %v301_v46  ;;  %v408_v51 = vpack.c.bf16 %v310_v49, %v303_v48  ;;  %v300_v52 = vld [vmem:[%s2700_s26 + $0x70] sm:$0xff]  ;;  %v307_v53 = vld [vmem:[%s2700_s26 + $0xa8] sm:$0xff]  ;;  %v302_v54 = vld [vmem:[%s2700_s26 + $0x80] sm:$0xff] }
  0x16   : > { %2165 = vmatprep.subr.bf16.mxu1 %v2438_v17  ;;  %1007 = vmatprep.mubr.bf16.mxu1 %v401_v39  ;;  %v309_v55 = vld [vmem:[%s2700_s26 + $0xb8] sm:$0xff]  ;;  %v405_v56 = vpack.c.bf16 %v307_v53, %v300_v52  ;;  %v315_v60 = vld [vmem:[%s2700_s26 + $0xe8] sm:$0xff]  ;;  %v322_v61 = vld [vmem:[%s2700_s26 + $0x120] sm:$0xff] }
  0x17   : > { %v407_v58 = vpack.c.bf16 %v309_v55, %v302_v54  ;;  %v413_v62 = vpack.c.bf16 %v322_v61, %v315_v60  ;;  %v317_v63 = vld [vmem:[%s2700_s26 + $0xf8] sm:$0xff]  ;;  %v324_v0 = vld [vmem:[%s2700_s26 + $0x130] sm:$0xff]  ;;  %v314_v2 = vld [vmem:[%s2700_s26 + $0xe0] sm:$0xff] }
  0x18   : > { %2102 = vmatpush3.bf16.msra.mxu0 %v2439_v18  ;;  %v415_v1 = vpack.c.bf16 %v324_v0, %v317_v63  ;;  %v321_v3 = vld [vmem:[%s2700_s26 + $0x118] sm:$0xff]  ;;  %v316_v4 = vld [vmem:[%s2700_s26 + $0xf0] sm:$0xff]  ;;  %v323_v7 = vld [vmem:[%s2700_s26 + $0x128] sm:$0xff] }
  0x19   : > { %2166 = vmatpush3.bf16.msra.mxu1 %v2440_v19  ;;  %2103 = vmatprep.subr.bf16.mxu0 %v2441_v20  ;;  %v2457_v5 = vld [vmem:[%s3112_s1 + $0x150] sm:$0xff]   ;;  %v329_v8 = vld [vmem:[%s2700_s26 + $0x158] sm:$0xff]  ;;  %v331_v10 = vld [vmem:[%s2700_s26 + $0x168] sm:$0xff]  ;;  %v412_v12 = vpack.c.bf16 %v321_v3, %v314_v2  ;;  %v414_v13 = vpack.c.bf16 %v323_v7, %v316_v4 }
  0x1a   : > { %2167 = vmatprep.subr.bf16.mxu1 %v2442_v21  ;;  %v2458_v6 = vld [vmem:[%s3112_s1 + $0x110] sm:$0xff]   ;;  %v338_v11 = vld [vmem:[%s2700_s26 + $0x1a0] sm:$0xff]  ;;  %v2459_v15 = vld [vmem:[%s3112_s1 + $0x158] sm:$0xff]  }
  0x1b   : > { %v336_v9 = vld [vmem:[%s2700_s26 + $0x190] sm:$0xff]  ;;  %v422_v16 = vpack.c.bf16 %v338_v11, %v331_v10  ;;  %v2460_v17 = vld [vmem:[%s3112_s1 + $0x118] sm:$0xff]   ;;  %v335_v19 = vld [vmem:[%s2700_s26 + $0x188] sm:$0xff] }
  0x1c   : > { %2104 = vmatpush3.bf16.msra.mxu0 %v2443_v22  ;;  %v420_v14 = vpack.c.bf16 %v336_v9, %v329_v8  ;;  %v328_v18 = vld [vmem:[%s2700_s26 + $0x150] sm:$0xff]  ;;  %v330_v20 = vld [vmem:[%s2700_s26 + $0x160] sm:$0xff]  ;;  %v337_v21 = vld [vmem:[%s2700_s26 + $0x198] sm:$0xff] }
  0x1d   : > { %2168 = vmatpush3.bf16.msra.mxu1 %v2444_v23  ;;  %2105 = vmatprep.subr.bf16.mxu0 %v2445_v24  ;;  %v343_v22 = vld [vmem:[%s2700_s26 + $0x1c8] sm:$0xff]  ;;  %v350_v23 = vld [vmem:[%s2700_s26 + $0x200] sm:$0xff]  ;;  %v349_v35 = vld [vmem:[%s2700_s26 + $0x1f8] sm:$0xff] }
  0x1e   : > { %2169 = vmatprep.subr.bf16.mxu1 %v2446_v25  ;;  %v2461_v24 = vld [vmem:[%s3112_s1 + $0x160] sm:$0xff]   ;;  %v345_v25 = vld [vmem:[%s2700_s26 + $0x1d8] sm:$0xff]  ;;  %v2463_v32 = vld [vmem:[%s3112_s1 + $0x168] sm:$0xff]  }
  0x1f   : > { %v2464_v33 = vld [vmem:[%s3112_s1 + $0x128] sm:$0xff]   ;;  %v342_v34 = vld [vmem:[%s2700_s26 + $0x1c0] sm:$0xff]  ;;  %v344_v36 = vld [vmem:[%s2700_s26 + $0x1d0] sm:$0xff] }
  0x20   : > { %2106 = vmatpush3.bf16.msra.mxu0 %v2447_v26  ;;  %v352_v26 = vld [vmem:[%s2700_s26 + $0x210] sm:$0xff]  ;;  %v351_v37 = vld [vmem:[%s2700_s26 + $0x208] sm:$0xff]  ;;  %v357_v38 = vld [vmem:[%s2700_s26 + $0x238] sm:$0xff] }
  0x21   : > { %2170 = vmatpush3.bf16.msra.mxu1 %v2448_v27  ;;  %2107 = vmatprep.subr.bf16.mxu0 %v2449_v28  ;;  %v2462_v27 = vld [vmem:[%s3112_s1 + $0x120] sm:$0xff]   ;;  %v419_v28 = vpack.c.bf16 %v335_v19, %v328_v18  ;;  %v364_v39 = vld [vmem:[%s2700_s26 + $0x270] sm:$0xff]  ;;  %v2467_v49 = vld [vmem:[%s3112_s1 + $0x178] sm:$0xff]  }
  0x22   : > { %2171 = vmatprep.subr.bf16.mxu1 %v2450_v29  ;;  %v421_v29 = vpack.c.bf16 %v337_v21, %v330_v20  ;;  %v366_v41 = vld [vmem:[%s2700_s26 + $0x280] sm:$0xff]  ;;  %v2465_v42 = vld [vmem:[%s3112_s1 + $0x170] sm:$0xff]   ;;  %v434_v46 = vpack.c.bf16 %v364_v39, %v357_v38  ;;  %v2468_v52 = vld [vmem:[%s3112_s1 + $0x138] sm:$0xff]  }
  0x23   : > { %v356_v48 = vld [vmem:[%s2700_s26 + $0x230] sm:$0xff]  ;;  %v365_v53 = vld [vmem:[%s2700_s26 + $0x278] sm:$0xff]  ;;  %v371_v54 = vld [vmem:[%s2700_s26 + $0x2a8] sm:$0xff] }
  0x24   : > { %2108 = vmatpush3.bf16.msra.mxu0 %v2451_v30  ;;  %v427_v30 = vpack.c.bf16 %v350_v23, %v343_v22  ;;  %v378_v55 = vld [vmem:[%s2700_s26 + $0x2e0] sm:$0xff]  ;;  %v377_v0 = vld [vmem:[%s2700_s26 + $0x2d8] sm:$0xff]  ;;  %v379_v2 = vld [vmem:[%s2700_s26 + $0x2e8] sm:$0xff] }
  0x25   : > { %2172 = vmatpush3.bf16.msra.mxu1 %v2452_v31  ;;  %2221 = vmatprep.subr.bf16.mxu0 %v2453_v44  ;;  %v429_v31 = vpack.c.bf16 %v352_v26, %v345_v25  ;;  %v441_v60 = vpack.c.bf16 %v378_v55, %v371_v54  ;;  %v370_v63 = vld [vmem:[%s2700_s26 + $0x2a0] sm:$0xff]  ;;  %v385_v3 = vld [vmem:[%s2700_s26 + $0x318] sm:$0xff]  ;;  %v392_v4 = vld [vmem:[%s2700_s26 + $0x350] sm:$0xff] }
  0x26   : > { %2396 = vmatprep.subr.bf16.mxu1 %v2453_v44  ;;  %v2466_v44 = vld [vmem:[%s3112_s1 + $0x130] sm:$0xff]   ;;  %v440_v7 = vpack.c.bf16 %v377_v0, %v370_v63  ;;  %v448_v9 = vpack.c.bf16 %v392_v4, %v385_v3  ;;  %v382_v18 = vld [vmem:[%s2700_s26 + $0x300] sm:$0xff]  ;;  %v381_v26 = vld [vmem:[%s2700_s26 + $0x2f8] sm:$0xff] }
  0x27   : > { %911 = vmatmul.mubr.bf16.vlgmr.msra.gmra.mrb[0].mxu0 %v398_v40  ;;  %v359_v40 = vld [vmem:[%s2700_s26 + $0x248] sm:$0xff]  ;;  %v384_v11 = vld [vmem:[%s2700_s26 + $0x310] sm:$0xff]  ;;  %v290_v23 = vld [vmem:[%s2700_s26 + $0x20] sm:$0xff] }
  0x28   : > { %1008 = vmatmul.mubr.bf16.vlgmr.msra.gmra.mrb[0].mxu1 %v400_v43  ;;  %2222 = vmatpush3.bf16.msra.mxu0 %v2454_v45  ;;  %v426_v43 = vpack.c.bf16 %v349_v35, %v342_v34  ;;  %v436_v47 = vpack.c.bf16 %v366_v41, %v359_v40  ;;  %v374_v25 = vld [vmem:[%s2700_s26 + $0x2c0] sm:$0xff]  ;;  %v304_v35 = vld [vmem:[%s2700_s26 + $0x90] sm:$0xff]  ;;  %v395_v38 = vld [vmem:[%s2700_s26 + $0x368] sm:$0xff] }
  0x29   : > { %2404 = vmatpush3.bf16.msra.mxu1 %v2454_v45  ;;  %918 = vmatprep.mubr.bf16.mxu0 %v406_v50  ;;  %v428_v45 = vpack.c.bf16 %v351_v37, %v344_v36  ;;  %v363_v50 = vld [vmem:[%s2700_s26 + $0x268] sm:$0xff]  ;;  %v388_v37 = vld [vmem:[%s2700_s26 + $0x330] sm:$0xff]  ;;  %v326_v40 = vld [vmem:[%s2700_s26 + $0x140] sm:$0xff] }
  0x2a   : > { %1015 = vmatprep.mubr.bf16.mxu1 %v408_v51  ;;  %2223 = vmatprep.subr.bf16.mxu0 %v2455_v57  ;;  %v358_v51 = vld [vmem:[%s2700_s26 + $0x240] sm:$0xff]  ;;  %v311_v36 = vld [vmem:[%s2700_s26 + $0xc8] sm:$0xff]  ;;  %v292_v41 = vld [vmem:[%s2700_s26 + $0x30] sm:$0xff] }
  0x2b   : > { %2397 = vmatprep.subr.bf16.mxu1 %v2455_v57  ;;  %v380_v57 = vld [vmem:[%s2700_s26 + $0x2f0] sm:$0xff]  ;;  %v319_v39 = vld [vmem:[%s2700_s26 + $0x108] sm:$0xff]  ;;  %v354_v0 = vld [vmem:[%s2700_s26 + $0x220] sm:$0xff] }
  0x2c   : > { %2224 = vmatpush3.bf16.msra.mxu0 %v2456_v59  ;;  %v327_v54 = vld [vmem:[%s2700_s26 + $0x148] sm:$0xff] }
  0x2d   : > { %2405 = vmatpush3.bf16.msra.mxu1 %v2456_v59  ;;  %2225 = vmatprep.subr.bf16.mxu0 %v2457_v5  ;;  %v435_v59 = vpack.c.bf16 %v365_v53, %v358_v51  ;;  %v333_v51 = vld [vmem:[%s2700_s26 + $0x178] sm:$0xff]  ;;  %v320_v53 = vld [vmem:[%s2700_s26 + $0x110] sm:$0xff]  ;;  %v347_v63 = vld [vmem:[%s2700_s26 + $0x1e8] sm:$0xff] }
  0x2e   : > { %2398 = vmatprep.subr.bf16.mxu1 %v2457_v5  ;;  %v387_v5 = vld [vmem:[%s2700_s26 + $0x328] sm:$0xff] }
  0x2f   : > { %919 = vmatmul.mubr.bf16.gmra.mrb[4].mxu0 %v405_v56  ;;  %v373_v56 = vld [vmem:[%s2700_s26 + $0x2b8] sm:$0xff] }
  0x30   : > { %1016 = vmatmul.mubr.bf16.gmra.mrb[4].mxu1 %v407_v58  ;;  %926 = vmatprep.mubr.bf16.mxu0 %v413_v62  ;;  %v433_v58 = vpack.c.bf16 %v363_v50, %v356_v48  ;;  %v443_v61 = vpack.c.bf16 %v380_v57, %v373_v56  ;;  %v2469_v62 = vld [vmem:[%s3112_s1 + $0x180] sm:$0xff]   ;;  %v325_v48 = vld [vmem:[%s2700_s26 + $0x138] sm:$0xff] }
  0x31   : > { %1023 = vmatprep.mubr.bf16.mxu1 %v415_v1  ;;  %2226 = vmatpush3.bf16.msra.mxu0 %v2458_v6  ;;  %v372_v1 = vld [vmem:[%s2700_s26 + $0x2b0] sm:$0xff]  ;;  %v313_v50 = vld [vmem:[%s2700_s26 + $0xd8] sm:$0xff] }
  0x32   : > { %2406 = vmatpush3.bf16.msra.mxu1 %v2458_v6  ;;  %2227 = vmatprep.subr.bf16.mxu0 %v2459_v15  ;;  %v394_v6 = vld [vmem:[%s2700_s26 + $0x360] sm:$0xff]  ;;  %v442_v8 = vpack.c.bf16 %v379_v2, %v372_v1  ;;  %v348_v1 = vld [vmem:[%s2700_s26 + $0x1f0] sm:$0xff]  ;;  %v355_v2 = vld [vmem:[%s2700_s26 + $0x228] sm:$0xff] }
  0x33   : > { %2399 = vmatprep.subr.bf16.mxu1 %v2459_v15  ;;  %v450_v10 = vpack.c.bf16 %v394_v6, %v387_v5  ;;  %v291_v15 = vld [vmem:[%s2700_s26 + $0x28] sm:$0xff]  ;;  %v431_v5 = vpack.c.bf16 %v354_v0, %v347_v63  ;;  %v432_v6 = vpack.c.bf16 %v355_v2, %v348_v1 }
  0x35   : > { %2228 = vmatpush3.bf16.msra.mxu0 %v2460_v17 }
  0x36   : > { %2407 = vmatpush3.bf16.msra.mxu1 %v2460_v17  ;;  %2229 = vmatprep.subr.bf16.mxu0 %v2461_v24  ;;  %v375_v17 = vld [vmem:[%s2700_s26 + $0x2c8] sm:$0xff] }
  0x37   : > { %927 = vmatmul.mubr.bf16.gmra.mrb[8].mxu0 %v412_v12  ;;  %2400 = vmatprep.subr.bf16.mxu1 %v2461_v24  ;;  %v391_v12 = vld [vmem:[%s2700_s26 + $0x348] sm:$0xff]  ;;  %v445_v22 = vpack.c.bf16 %v382_v18, %v375_v17  ;;  %v297_v24 = vld [vmem:[%s2700_s26 + $0x58] sm:$0xff] }
  0x38   : > { %1024 = vmatmul.mubr.bf16.gmra.mrb[8].mxu1 %v414_v13  ;;  %934 = vmatprep.mubr.bf16.mxu0 %v420_v14  ;;  %v386_v13 = vld [vmem:[%s2700_s26 + $0x320] sm:$0xff]  ;;  %v393_v14 = vld [vmem:[%s2700_s26 + $0x358] sm:$0xff]  ;;  %v447_v19 = vpack.c.bf16 %v391_v12, %v384_v11  ;;  %v368_v12 = vld [vmem:[%s2700_s26 + $0x290] sm:$0xff] }
  0x39   : > { %1031 = vmatprep.mubr.bf16.mxu1 %v422_v16  ;;  %2230 = vmatpush3.bf16.msra.mxu0 %v2462_v27  ;;  %v298_v16 = vld [vmem:[%s2700_s26 + $0x60] sm:$0xff]  ;;  %v449_v20 = vpack.c.bf16 %v393_v14, %v386_v13  ;;  %v361_v11 = vld [vmem:[%s2700_s26 + $0x258] sm:$0xff]  ;;  %v376_v13 = vld [vmem:[%s2700_s26 + $0x2d0] sm:$0xff] }
  0x3a   : > { %2408 = vmatpush3.bf16.msra.mxu1 %v2462_v27  ;;  %2231 = vmatprep.subr.bf16.mxu0 %v2463_v32  ;;  %v403_v21 = vpack.c.bf16 %v298_v16, %v291_v15  ;;  %v305_v27 = vld [vmem:[%s2700_s26 + $0x98] sm:$0xff]  ;;  %v383_v14 = vld [vmem:[%s2700_s26 + $0x308] sm:$0xff]  ;;  %v438_v17 = vpack.c.bf16 %v368_v12, %v361_v11 }
  0x3b   : > { %2401 = vmatprep.subr.bf16.mxu1 %v2463_v32  ;;  %v444_v32 = vpack.c.bf16 %v381_v26, %v374_v25  ;;  %v446_v18 = vpack.c.bf16 %v383_v14, %v376_v13  ;;  %v2470_v25 = vld [vmem:[%s3114_s3] sm:$0xff]   ;;  %v2471_v26 = vld [vmem:[%s3114_s3 + $0x8] sm:$0xff]  }
  0x3d   : > { %2232 = vmatpush3.bf16.msra.mxu0 %v2464_v33 }
  0x3e   : > { %2409 = vmatpush3.bf16.msra.mxu1 %v2464_v33  ;;  %2233 = vmatprep.subr.bf16.mxu0 %v2465_v42 }
  0x3f   : > { %935 = vmatmul.mubr.bf16.gmra.mrb[12].mxu0 %v419_v28  ;;  %2402 = vmatprep.subr.bf16.mxu1 %v2465_v42  ;;  %v312_v28 = vld [vmem:[%s2700_s26 + $0xd0] sm:$0xff]  ;;  %v299_v42 = vld [vmem:[%s2700_s26 + $0x68] sm:$0xff] }
  0x40   : > { %1032 = vmatmul.mubr.bf16.gmra.mrb[12].mxu1 %v421_v29  ;;  %942 = vmatprep.mubr.bf16.mxu0 %v427_v30  ;;  %v389_v29 = vld [vmem:[%s2700_s26 + $0x338] sm:$0xff]  ;;  %v396_v30 = vld [vmem:[%s2700_s26 + $0x370] sm:$0xff]  ;;  %v410_v33 = vpack.c.bf16 %v312_v28, %v305_v27 }
  0x41   : > { %1039 = vmatprep.mubr.bf16.mxu1 %v429_v31  ;;  %2234 = vmatpush3.bf16.msra.mxu0 %v2466_v44  ;;  %v402_v31 = vpack.c.bf16 %v297_v24, %v290_v23  ;;  %v452_v34 = vpack.c.bf16 %v396_v30, %v389_v29  ;;  %v2472_v27 = vld [vmem:[%s3114_s3 + $0x10] sm:$0xff]   ;;  %v2473_v28 = vld [vmem:[%s3114_s3 + $0x18] sm:$0xff]   ;;  %v2474_v29 = vld [vmem:[%s3114_s3 + $0x20] sm:$0xff]  }
  0x42   : > { %2410 = vmatpush3.bf16.msra.mxu1 %v2466_v44  ;;  %2235 = vmatprep.subr.bf16.mxu0 %v2467_v49  ;;  %v451_v44 = vpack.c.bf16 %v395_v38, %v388_v37  ;;  %v2475_v30 = vld [vmem:[%s3114_s3 + $0x28] sm:$0xff]  }
  0x43   : > { %2403 = vmatprep.subr.bf16.mxu1 %v2467_v49  ;;  %v306_v49 = vld [vmem:[%s2700_s26 + $0xa0] sm:$0xff] }
  0x44   : > { %v411_v56 = vpack.c.bf16 %v313_v50, %v306_v49 }
  0x45   : > { %2236 = vmatpush3.bf16.msra.mxu0 %v2468_v52 }
  0x46   : > { %2411 = vmatpush3.bf16.msra.mxu1 %v2468_v52  ;;  %v340_v52 = vld [vmem:[%s2700_s26 + $0x1b0] sm:$0xff] }
  0x47   : > { %943 = vmatmul.mubr.bf16.gmra.mrb[16].mxu0 %v426_v43  ;;  %2322 = vmatprep.subr.bf16.mxu1 %v2469_v62  ;;  %v409_v43 = vpack.c.bf16 %v311_v36, %v304_v35  ;;  %v424_v57 = vpack.c.bf16 %v340_v52, %v333_v51  ;;  %v2912_v36 = vld [vmem:[%s3113_s2] ss:$0 sm:$0xff] }
  0x48   : > { %1040 = vmatmul.mubr.bf16.gmra.mrb[16].mxu1 %v428_v45  ;;  %950 = vmatprep.mubr.bf16.mxu0 %v434_v46  ;;  %v417_v45 = vpack.c.bf16 %v326_v40, %v319_v39  ;;  %v404_v46 = vpack.c.bf16 %v299_v42, %v292_v41 }
  0x49   : > { %1047 = vmatprep.mubr.bf16.mxu1 %v436_v47  ;;  %v318_v47 = vld [vmem:[%s2700_s26 + $0x100] sm:$0xff] }
  0x4a   : > { %v416_v55 = vpack.c.bf16 %v325_v48, %v318_v47 }
  0x4f   : > { %951 = vmatmul.mubr.bf16.gmra.mrb[20].mxu0 %v433_v58  ;;  %v418_v58 = vpack.c.bf16 %v327_v54, %v320_v53 }
  0x50   : > { %1048 = vmatmul.mubr.bf16.gmra.mrb[20].mxu1 %v435_v59  ;;  %958 = vmatprep.mubr.bf16.mxu0 %v441_v60  ;;  %v332_v59 = vld [vmem:[%s2700_s26 + $0x170] sm:$0xff]  ;;  %v339_v60 = vld [vmem:[%s2700_s26 + $0x1a8] sm:$0xff] }
  0x51   : > { %1055 = vmatprep.mubr.bf16.mxu1 %v443_v61  ;;  %v334_v61 = vld [vmem:[%s2700_s26 + $0x180] sm:$0xff]  ;;  %v423_v3 = vpack.c.bf16 %v339_v60, %v332_v59 }
  0x57   : > { %959 = vmatmul.mubr.bf16.gmra.mrb[24].mxu0 %v440_v7  ;;  %v346_v7 = vld [vmem:[%s2700_s26 + $0x1e0] sm:$0xff] }
  0x58   : > { %1056 = vmatmul.mubr.bf16.gmra.mrb[24].mxu1 %v442_v8  ;;  %966 = vmatprep.mubr.bf16.mxu0 %v448_v9  ;;  %v353_v8 = vld [vmem:[%s2700_s26 + $0x218] sm:$0xff]  ;;  %v362_v9 = vld [vmem:[%s2700_s26 + $0x260] sm:$0xff] }
  0x59   : > { %1063 = vmatprep.mubr.bf16.mxu1 %v450_v10  ;;  %v369_v10 = vld [vmem:[%s2700_s26 + $0x298] sm:$0xff]  ;;  %v430_v15 = vpack.c.bf16 %v353_v8, %v346_v7 }
  0x5a   : > { %v439_v16 = vpack.c.bf16 %v369_v10, %v362_v9 }
  0x5f   : > { %967 = vmatmul.mubr.bf16.gmra.mrb[28].mxu0 %v447_v19  ;;  %v360_v19 = vld [vmem:[%s2700_s26 + $0x250] sm:$0xff] }
  0x60   : > { %1064 = vmatmul.mubr.bf16.gmra.mrb[28].mxu1 %v449_v20  ;;  %1104 = vmatprep.mubr.bf16.mxu0 %v403_v21  ;;  %v367_v20 = vld [vmem:[%s2700_s26 + $0x288] sm:$0xff]  ;;  %v390_v21 = vld [vmem:[%s2700_s26 + $0x340] sm:$0xff] }
  0x61   : > { %1152 = vmatprep.mubr.bf16.mxu1 %v445_v22  ;;  %v397_v22 = vld [vmem:[%s2700_s26 + $0x378] sm:$0xff]  ;;  %v437_v23 = vpack.c.bf16 %v367_v20, %v360_v19 }
  0x62   : > { %v453_v24 = vpack.c.bf16 %v397_v22, %v390_v21 }
  0x67   : > { %1105 = vmatmul.mubr.bf16.vlgmr.msra.gmra.mrb[32].mxu0 %v402_v31  ;;  %v2476_v31 = vld [vmem:[%s3114_s3 + $0x30] sm:$0xff]  }
  0x68   : > { %1153 = vmatmul.mubr.bf16.vlgmr.msra.gmra.mrb[32].mxu1 %v444_v32  ;;  %1112 = vmatprep.mubr.bf16.mxu0 %v410_v33  ;;  %v2477_v32 = vld [vmem:[%s3114_s3 + $0x38] sm:$0xff]   ;;  %v2478_v33 = vld [vmem:[%s3116_s5] sm:$0xff]  }
  0x69   : > { %1160 = vmatprep.mubr.bf16.mxu1 %v452_v34  ;;  %2323 = vmatpush3.bf16.msra.mxu1 %v2469_v62  ;;  %v341_v62 = vld [vmem:[%s2700_s26 + $0x1b8] sm:$0xff]  ;;  %v2479_v34 = vld [vmem:[%s3116_s5 + $0x8] sm:$0xff]  }
  0x6a   : > { %v425_v4 = vpack.c.bf16 %v341_v62, %v334_v61  ;;  %2340 = vmatprep.subr.bf16.mxu1 %v2470_v25  ;;  %2372 = vmatprep.subr.bf16.mxu0 %v2478_v33 }
  0x6b   : > { %2373 = vmatpush3.bf16.msra.mxu0 %v2478_v33 }
  0x6c   : > { %2374 = vmatprep.subr.bf16.mxu0 %v2479_v34 }
  0x6f   : > { %1113 = vmatmul.mubr.bf16.gmra.mrb[36].mxu0 %v409_v43 }
  0x70   : > { %1161 = vmatmul.mubr.bf16.gmra.mrb[36].mxu1 %v451_v44  ;;  %1120 = vmatprep.mubr.bf16.mxu0 %v417_v45  ;;  %v2480_v45 = vld [vmem:[%s3116_s5 + $0x10] sm:$0xff]  }
  0x71   : > { %2324 = vmatprep.mubr.msk.bf16.mxu1 %vm853_vm0, %v404_v46  ;;  %2375 = vmatpush3.bf16.msra.mxu0 %v2479_v34 }
  0x72   : > { %2376 = vmatprep.subr.bf16.mxu0 %v2480_v45 }
  0x75   : > { %2377 = vmatpush3.bf16.msra.mxu0 %v2480_v45 }
  0x77   : > { %1121 = vmatmul.mubr.bf16.gmra.mrb[40].mxu0 %v416_v55 }
  0x78   : > { %2325 = vmatmul.mubr.msk.bf16.vlgmr.msra.gmra.mrb[40].mxu1 %vm853_vm0, %v411_v56  ;;  %1128 = vmatprep.mubr.bf16.mxu0 %v424_v57 }
  0x79   : > { %2328 = vmatprep.mubr.msk.bf16.mxu1 %vm853_vm0, %v418_v58  ;;  %2341 = vmatpush3.bf16.msra.mxu1 %v2470_v25 }
  0x7a   : > { %2342 = vmatprep.subr.bf16.mxu1 %v2471_v26 }
  0x7d   : > { %2343 = vmatpush3.bf16.msra.mxu1 %v2471_v26 }
  0x7e   : > { %2344 = vmatprep.subr.bf16.mxu1 %v2472_v27 }
  0x7f   : > { %1129 = vmatmul.mubr.bf16.gmra.mrb[44].mxu0 %v423_v3 }
  0x80   : > { %2329 = vmatmul.mubr.msk.bf16.gmra.mrb[44].mxu1 %vm853_vm0, %v425_v4  ;;  %1136 = vmatprep.mubr.bf16.mxu0 %v431_v5 }
  0x81   : > { %2332 = vmatprep.mubr.msk.bf16.mxu1 %vm853_vm0, %v432_v6  ;;  %2345 = vmatpush3.bf16.msra.mxu1 %v2472_v27 }
  0x82   : > { %2346 = vmatprep.subr.bf16.mxu1 %v2473_v28 }
  0x85   : > { %2347 = vmatpush3.bf16.msra.mxu1 %v2473_v28 }
  0x86   : > { %2348 = vmatprep.subr.bf16.mxu1 %v2474_v29 }
  0x87   : > { %1137 = vmatmul.mubr.bf16.gmra.mrb[48].mxu0 %v430_v15 }
  0x88   : > { %2333 = vmatmul.mubr.msk.bf16.gmra.mrb[48].mxu1 %vm853_vm0, %v439_v16  ;;  %1144 = vmatprep.mubr.bf16.mxu0 %v438_v17 }
  0x89   : > { %2336 = vmatprep.mubr.msk.bf16.mxu1 %vm853_vm0, %v446_v18  ;;  %2349 = vmatpush3.bf16.msra.mxu1 %v2474_v29 }
  0x8a   : > { %2350 = vmatprep.subr.bf16.mxu1 %v2475_v30 }
  0x8d   : > { %2351 = vmatpush3.bf16.msra.mxu1 %v2475_v30 }
  0x8e   : > { %2352 = vmatprep.subr.bf16.mxu1 %v2476_v31 }
  0x8f   : > { %1145 = vmatmul.mubr.bf16.gmra.mrb[52].mxu0 %v437_v23 }
  0x90   : > { %2337 = vmatmul.mubr.msk.bf16.gmra.mrb[52].mxu1 %vm853_vm0, %v453_v24 }
  0x91   : > { %2353 = vmatpush3.bf16.msra.mxu1 %v2476_v31 }
  0x92   : > { %2354 = vmatprep.subr.bf16.mxu1 %v2477_v32 }
  0x95   : > { %2355 = vmatpush3.bf16.msra.mxu1 %v2477_v32 }
  0xfa   : > { %v2109_v35 = vpop.f32.mrb[0].mxu0 }
  0xfb   : > { %v2110_v37 = vpop.f32.mrb[1].mxu0  ;;  %v2173_v38 = vpop.f32.mrb[0].mxu1 }
  0xfc   : > { %v2111_v39 = vadd.f32 %v2110_v37, %v2109_v35  ;;  %v2112_v40 = vpop.f32.mrb[2].mxu0  ;;  %v2174_v41 = vpop.f32.mrb[1].mxu1 }
  0xfd   : > { %v2113_v42 = vpop.f32.mrb[3].mxu0  ;;  %v2175_v43 = vadd.f32 %v2174_v41, %v2173_v38  ;;  %v2176_v44 = vpop.f32.mrb[2].mxu1 }
  0xfe   : > { %v913_v46 = vadd.f32 %v2111_v39, %v2912_v36  ;;  %v2114_v47 = vadd.f32 %v2113_v42, %v2112_v40  ;;  %v2177_v48 = vpop.f32.mrb[3].mxu1 }
  0xff   : > { %v2178_v49 = vadd.f32 %v2177_v48, %v2176_v44 }
 0x100   : > { %v916_v50 = vadd.f32 %v2114_v47, %v2912_v36  ;;  %v2919_v51 = vadd.f32 %v2175_v43, %v913_v46 }
 0x102   : > { %v2921_v52 = vadd.f32 %v2178_v49, %v916_v50  ;;  %v2115_v53 = vpop.f32.mrb[4].mxu0 }
 0x103   : > { %v2116_v54 = vpop.f32.mrb[5].mxu0  ;;  %v2179_v55 = vpop.f32.mrb[4].mxu1 }
 0x104   : > { %v2117_v56 = vadd.f32 %v2116_v54, %v2115_v53  ;;  %v2118_v57 = vpop.f32.mrb[6].mxu0  ;;  %v2180_v58 = vpop.f32.mrb[5].mxu1 }
 0x105   : > { %v2119_v59 = vpop.f32.mrb[7].mxu0  ;;  %v2181_v60 = vadd.f32 %v2180_v58, %v2179_v55  ;;  %v2182_v61 = vpop.f32.mrb[6].mxu1 }
 0x106   : > { %v921_v62 = vadd.f32 %v2117_v56, %v2912_v36  ;;  %v2120_v63 = vadd.f32 %v2119_v59, %v2118_v57  ;;  %v2183_v0 = vpop.f32.mrb[7].mxu1 }
 0x107   : > { %v2184_v1 = vadd.f32 %v2183_v0, %v2182_v61 }
 0x108   : > { %v924_v2 = vadd.f32 %v2120_v63, %v2912_v36  ;;  %v2925_v3 = vadd.f32 %v2181_v60, %v921_v62 }
 0x10a   : > { %v2927_v4 = vadd.f32 %v2184_v1, %v924_v2  ;;  %v2121_v5 = vpop.f32.mrb[8].mxu0 }
 0x10b   : > { %v2122_v6 = vpop.f32.mrb[9].mxu0  ;;  %v2185_v7 = vpop.f32.mrb[8].mxu1 }
 0x10c   : > { %v2123_v8 = vadd.f32 %v2122_v6, %v2121_v5  ;;  %v2124_v9 = vpop.f32.mrb[10].mxu0  ;;  %v2186_v10 = vpop.f32.mrb[9].mxu1 }
 0x10d   : > { %v2125_v11 = vpop.f32.mrb[11].mxu0  ;;  %v2187_v12 = vadd.f32 %v2186_v10, %v2185_v7  ;;  %v2188_v13 = vpop.f32.mrb[10].mxu1 }
 0x10e   : > { %v929_v14 = vadd.f32 %v2123_v8, %v2912_v36  ;;  %v2126_v15 = vadd.f32 %v2125_v11, %v2124_v9  ;;  %v2189_v16 = vpop.f32.mrb[11].mxu1 }
 0x10f   : > { %v2190_v17 = vadd.f32 %v2189_v16, %v2188_v13 }
 0x110   : > { %v932_v18 = vadd.f32 %v2126_v15, %v2912_v36  ;;  %v2931_v19 = vadd.f32 %v2187_v12, %v929_v14 }
 0x112   : > { %v2933_v20 = vadd.f32 %v2190_v17, %v932_v18  ;;  %v2127_v21 = vpop.f32.mrb[12].mxu0 }
 0x113   : > { %v2128_v22 = vpop.f32.mrb[13].mxu0  ;;  %v2191_v23 = vpop.f32.mrb[12].mxu1 }
 0x114   : > { %v2129_v24 = vadd.f32 %v2128_v22, %v2127_v21  ;;  %v2130_v25 = vpop.f32.mrb[14].mxu0  ;;  %v2192_v26 = vpop.f32.mrb[13].mxu1 }
 0x115   : > { %v2131_v27 = vpop.f32.mrb[15].mxu0  ;;  %v2193_v28 = vadd.f32 %v2192_v26, %v2191_v23  ;;  %v2194_v29 = vpop.f32.mrb[14].mxu1 }
 0x116   : > { %v937_v30 = vadd.f32 %v2129_v24, %v2912_v36  ;;  %v2132_v31 = vadd.f32 %v2131_v27, %v2130_v25  ;;  %v2195_v32 = vpop.f32.mrb[15].mxu1 }
 0x117   : > { %v2196_v33 = vadd.f32 %v2195_v32, %v2194_v29 }
 0x118   : > { %v940_v34 = vadd.f32 %v2132_v31, %v2912_v36  ;;  %v2937_v35 = vadd.f32 %v2193_v28, %v937_v30 }
 0x11a   : > { %v2939_v37 = vadd.f32 %v2196_v33, %v940_v34  ;;  %v2133_v38 = vpop.f32.mrb[16].mxu0 }
 0x11b   : > { %v2134_v39 = vpop.f32.mrb[17].mxu0  ;;  %v2197_v40 = vpop.f32.mrb[16].mxu1 }
 0x11c   : > { %v2135_v41 = vadd.f32 %v2134_v39, %v2133_v38  ;;  %v2136_v42 = vpop.f32.mrb[18].mxu0  ;;  %v2198_v43 = vpop.f32.mrb[17].mxu1 }
 0x11d   : > { %v2137_v44 = vpop.f32.mrb[19].mxu0  ;;  %v2199_v45 = vadd.f32 %v2198_v43, %v2197_v40  ;;  %v2200_v46 = vpop.f32.mrb[18].mxu1 }
 0x11e   : > { %v945_v47 = vadd.f32 %v2135_v41, %v2912_v36  ;;  %v2138_v48 = vadd.f32 %v2137_v44, %v2136_v42  ;;  %v2201_v49 = vpop.f32.mrb[19].mxu1 }
 0x11f   : > { %v2202_v50 = vadd.f32 %v2201_v49, %v2200_v46 }
 0x120   : > { %v948_v53 = vadd.f32 %v2138_v48, %v2912_v36  ;;  %v2943_v54 = vadd.f32 %v2199_v45, %v945_v47 }
 0x122   : > { %v2945_v55 = vadd.f32 %v2202_v50, %v948_v53  ;;  %v2139_v56 = vpop.f32.mrb[20].mxu0 }
 0x123   : > { %v2140_v57 = vpop.f32.mrb[21].mxu0  ;;  %v2203_v58 = vpop.f32.mrb[20].mxu1 }
 0x124   : > { %v2141_v59 = vadd.f32 %v2140_v57, %v2139_v56  ;;  %v2142_v60 = vpop.f32.mrb[22].mxu0  ;;  %v2204_v61 = vpop.f32.mrb[21].mxu1 }
 0x125   : > { %v2143_v62 = vpop.f32.mrb[23].mxu0  ;;  %v2205_v63 = vadd.f32 %v2204_v61, %v2203_v58  ;;  %v2206_v0 = vpop.f32.mrb[22].mxu1 }
 0x126   : > { %v953_v1 = vadd.f32 %v2141_v59, %v2912_v36  ;;  %v2144_v2 = vadd.f32 %v2143_v62, %v2142_v60  ;;  %v2207_v5 = vpop.f32.mrb[23].mxu1 }
 0x127   : > { %v2208_v6 = vadd.f32 %v2207_v5, %v2206_v0 }
 0x128   : > { %v956_v7 = vadd.f32 %v2144_v2, %v2912_v36  ;;  %v2949_v8 = vadd.f32 %v2205_v63, %v953_v1 }
 0x12a   : > { %v2951_v9 = vadd.f32 %v2208_v6, %v956_v7  ;;  %v2145_v10 = vpop.f32.mrb[24].mxu0 }
 0x12b   : > { %v2146_v11 = vpop.f32.mrb[25].mxu0  ;;  %v2209_v12 = vpop.f32.mrb[24].mxu1 }
 0x12c   : > { %v2147_v13 = vadd.f32 %v2146_v11, %v2145_v10  ;;  %v2148_v14 = vpop.f32.mrb[26].mxu0  ;;  %v2210_v15 = vpop.f32.mrb[25].mxu1 }
 0x12d   : > { %v2149_v16 = vpop.f32.mrb[27].mxu0  ;;  %v2211_v17 = vadd.f32 %v2210_v15, %v2209_v12  ;;  %v2212_v18 = vpop.f32.mrb[26].mxu1 }
 0x12e   : > { %v961_v21 = vadd.f32 %v2147_v13, %v2912_v36  ;;  %v2150_v22 = vadd.f32 %v2149_v16, %v2148_v14  ;;  %v2213_v23 = vpop.f32.mrb[27].mxu1 }
 0x12f   : > { %v2214_v24 = vadd.f32 %v2213_v23, %v2212_v18 }
 0x130   : > { %v964_v25 = vadd.f32 %v2150_v22, %v2912_v36  ;;  %v1058_v26 = vadd.f32 %v2211_v17, %v961_v21 }
 0x132   : > { %v1061_v27 = vadd.f32 %v2214_v24, %v964_v25  ;;  %v2151_v28 = vpop.f32.mrb[28].mxu0 }
 0x133   : > { %v2152_v29 = vpop.f32.mrb[29].mxu0  ;;  %v2215_v30 = vpop.f32.mrb[28].mxu1 }
 0x134   : > { %v2153_v31 = vadd.f32 %v2152_v29, %v2151_v28  ;;  %v2154_v32 = vpop.f32.mrb[30].mxu0  ;;  %v2216_v33 = vpop.f32.mrb[29].mxu1 }
 0x135   : > { %v2155_v34 = vpop.f32.mrb[31].mxu0  ;;  %v2217_v38 = vadd.f32 %v2216_v33, %v2215_v30  ;;  %v2218_v39 = vpop.f32.mrb[30].mxu1 }
 0x136   : > { %v969_v40 = vadd.f32 %v2153_v31, %v2912_v36  ;;  %v2156_v41 = vadd.f32 %v2155_v34, %v2154_v32  ;;  %v2219_v42 = vpop.f32.mrb[31].mxu1 }
 0x137   : > { %v2220_v43 = vadd.f32 %v2219_v42, %v2218_v39 }
 0x138   : > { %v972_v44 = vadd.f32 %v2156_v41, %v2912_v36  ;;  %v1066_v45 = vadd.f32 %v2217_v38, %v969_v40 }
 0x13a   : > { %v1069_v46 = vadd.f32 %v2220_v43, %v972_v44  ;;  %v2237_v47 = vpop.f32.mrb[32].mxu0 }
 0x13b   : > { %v2273_v48 = vpop.f32.mrb[32].mxu1  ;;  %v2238_v49 = vpop.f32.mrb[33].mxu0 }
 0x13c   : > { %v2239_v50 = vadd.f32 %v2238_v49, %v2237_v47  ;;  %v2274_v53 = vpop.f32.mrb[33].mxu1  ;;  %v2240_v56 = vpop.f32.mrb[34].mxu0 }
 0x13d   : > { %v2275_v57 = vadd.f32 %v2274_v53, %v2273_v48  ;;  %v2276_v58 = vpop.f32.mrb[34].mxu1  ;;  %v2241_v59 = vpop.f32.mrb[35].mxu0 }
 0x13e   : > { %v2242_v60 = vadd.f32 %v2241_v59, %v2240_v56  ;;  %v2277_v61 = vpop.f32.mrb[35].mxu1  ;;  %v1107_v62 = vadd.f32 %v2239_v50, %v2919_v51 }
 0x13f   : > { %v2278_v63 = vadd.f32 %v2277_v61, %v2276_v58  ;;  %v2958_v0 = vadd.f32 %v2275_v57, %v1058_v26 }
 0x140   : > { %v1110_v36 = vadd.f32 %v2242_v60, %v2921_v52 }
 0x141   : > { %v2961_v1 = vadd.f32 %v2278_v63, %v1061_v27 }
 0x142   : > { %v2243_v2 = vpop.f32.mrb[36].mxu0 }
 0x143   : > { %v2279_v5 = vpop.f32.mrb[36].mxu1  ;;  %v2244_v6 = vpop.f32.mrb[37].mxu0 }
 0x144   : > { %v2245_v7 = vadd.f32 %v2244_v6, %v2243_v2  ;;  %v2280_v10 = vpop.f32.mrb[37].mxu1  ;;  %v2246_v11 = vpop.f32.mrb[38].mxu0 }
 0x145   : > { %v2281_v12 = vadd.f32 %v2280_v10, %v2279_v5  ;;  %v2282_v13 = vpop.f32.mrb[38].mxu1  ;;  %v2247_v14 = vpop.f32.mrb[39].mxu0 }
 0x146   : > { %v2248_v15 = vadd.f32 %v2247_v14, %v2246_v11  ;;  %v2283_v16 = vpop.f32.mrb[39].mxu1  ;;  %v1115_v51 = vadd.f32 %v2245_v7, %v2925_v3 }
 0x147   : > { %v2284_v17 = vadd.f32 %v2283_v16, %v2282_v13  ;;  %v2964_v18 = vadd.f32 %v2281_v12, %v1066_v45 }
 0x148   : > { %v1118_v52 = vadd.f32 %v2248_v15, %v2927_v4 }
 0x149   : > { %v2967_v21 = vadd.f32 %v2284_v17, %v1069_v46 }
 0x14a   : > { %v2249_v22 = vpop.f32.mrb[40].mxu0 }
 0x14b   : > { %v2326_v23 = vpop.f32.mrb[40].mxu1  ;;  %v2250_v24 = vpop.f32.mrb[41].mxu0 }
 0x14c   : > { %v1212_v25 = vadd.f32 %v2326_v23, %v1115_v51  ;;  %v2251_v26 = vadd.f32 %v2250_v24, %v2249_v22  ;;  %v1203_v27 = vpop.f32.mrb[41].mxu1  ;;  %v2252_v28 = vpop.f32.mrb[42].mxu0 }
 0x14d   : > { %v1204_v29 = vadd.f32 %v1203_v27, %v1107_v62  ;;  %v2327_v30 = vpop.f32.mrb[42].mxu1  ;;  %v2253_v31 = vpop.f32.mrb[43].mxu0 }
 0x14e   : > { %v1215_v32 = vadd.f32 %v2327_v30, %v1118_v52  ;;  %v2254_v33 = vadd.f32 %v2253_v31, %v2252_v28  ;;  %v1206_v3 = vpop.f32.mrb[43].mxu1  ;;  %v1123_v34 = vadd.f32 %v2251_v26, %v2931_v19  ;;  %v1268_v39 = vmax.f32 %v1212_v25, 0.0 }
 0x14f   : > { %v1207_v38 = vadd.f32 %v1206_v3, %v1110_v36  ;;  %v1266_v41 = vmax.f32 %v1204_v29, 0.0 }
 0x150   : > { %v1269_v4 = vmax.f32 %v1215_v32, 0.0  ;;  %v1126_v40 = vadd.f32 %v2254_v33, %v2933_v20 }
 0x151   : > { %v1267_v42 = vmax.f32 %v1207_v38, 0.0 }
 0x152   : > { %v1283_v43 = vpack.c.bf16 %v1269_v4, %v1268_v39  ;;  %v2255_v44 = vpop.f32.mrb[44].mxu0 }
 0x153   : > { %v1282_v45 = vpack.c.bf16 %v1267_v42, %v1266_v41  ;;  %v2330_v46 = vpop.f32.mrb[44].mxu1  ;;  %v2256_v47 = vpop.f32.mrb[45].mxu0 }
 0x154   : > { %v2257_v48 = vadd.f32 %v2256_v47, %v2255_v44  ;;  %v1219_v49 = vpop.f32.mrb[45].mxu1  ;;  %v2258_v50 = vpop.f32.mrb[46].mxu0 }
 0x155   : > { %v1220_v53 = vadd.f32 %v1219_v49, %v1123_v34  ;;  %v2331_v56 = vpop.f32.mrb[46].mxu1  ;;  %2356 = vmatprep.mubr.bf16.mxu1 %v1282_v45  ;;  %v2259_v57 = vpop.f32.mrb[47].mxu0 }
 0x156   : > { %v1131_v19 = vadd.f32 %v2257_v48, %v2937_v35  ;;  %v2260_v58 = vadd.f32 %v2259_v57, %v2258_v50  ;;  %v1222_v59 = vpop.f32.mrb[47].mxu1  ;;  %2357 = vmatmul.mubr.bf16.vlgmr.msra.gmra.mrb[56].mxu1 %v1283_v43 }
 0x157   : > { %v1223_v20 = vadd.f32 %v1222_v59, %v1126_v40  ;;  %v1270_v62 = vmax.f32 %v1220_v53, 0.0 }
 0x158   : > { %v1228_v60 = vadd.f32 %v2330_v46, %v1131_v19  ;;  %v1134_v61 = vadd.f32 %v2260_v58, %v2939_v37 }
 0x159   : > { %v1271_v63 = vmax.f32 %v1223_v20, 0.0 }
 0x15a   : > { %v1231_v36 = vadd.f32 %v2331_v56, %v1134_v61  ;;  %v2261_v2 = vpop.f32.mrb[48].mxu0  ;;  %v1272_v10 = vmax.f32 %v1228_v60, 0.0 }
 0x15b   : > { %v1284_v5 = vpack.c.bf16 %v1271_v63, %v1270_v62  ;;  %v2262_v6 = vpop.f32.mrb[49].mxu0  ;;  %v2334_v7 = vpop.f32.mrb[48].mxu1 }
 0x15c   : > { %v1273_v11 = vmax.f32 %v1231_v36, 0.0  ;;  %v2263_v12 = vadd.f32 %v2262_v6, %v2261_v2  ;;  %v2264_v13 = vpop.f32.mrb[50].mxu0  ;;  %v1235_v14 = vpop.f32.mrb[49].mxu1 }
 0x15d   : > { %2360 = vmatprep.mubr.bf16.mxu1 %v1284_v5  ;;  %v2265_v35 = vpop.f32.mrb[51].mxu0  ;;  %v2335_v15 = vpop.f32.mrb[50].mxu1 }
 0x15e   : > { %v2266_v16 = vadd.f32 %v2265_v35, %v2264_v13  ;;  %v1139_v51 = vadd.f32 %v2263_v12, %v2943_v54  ;;  %v1285_v17 = vpack.c.bf16 %v1273_v11, %v1272_v10  ;;  %v1238_v37 = vpop.f32.mrb[51].mxu1 }
 0x160   : > { %v1236_v52 = vadd.f32 %v1235_v14, %v1139_v51  ;;  %2361 = vmatmul.mubr.bf16.gmra.mrb[60].mxu1 %v1285_v17  ;;  %v1142_v22 = vadd.f32 %v2266_v16, %v2945_v55 }
 0x162   : > { %v1239_v23 = vadd.f32 %v1238_v37, %v1142_v22  ;;  %v2267_v24 = vpop.f32.mrb[52].mxu0  ;;  %v1274_v27 = vmax.f32 %v1236_v52, 0.0 }
 0x163   : > { %v2338_v25 = vpop.f32.mrb[52].mxu1  ;;  %v2268_v26 = vpop.f32.mrb[53].mxu0 }
 0x164   : > { %v1275_v28 = vmax.f32 %v1239_v23, 0.0  ;;  %v1260_v29 = vadd.f32 %v2338_v25, %v2964_v18  ;;  %v2269_v30 = vadd.f32 %v2268_v26, %v2267_v24  ;;  %v1251_v31 = vpop.f32.mrb[53].mxu1  ;;  %v2270_v32 = vpop.f32.mrb[54].mxu0 }
 0x165   : > { %v1252_v33 = vadd.f32 %v1251_v31, %v2958_v0  ;;  %v2339_v54 = vpop.f32.mrb[54].mxu1  ;;  %v2271_v3 = vpop.f32.mrb[55].mxu0 }
 0x166   : > { %v1286_v34 = vpack.c.bf16 %v1275_v28, %v1274_v27  ;;  %v1147_v38 = vadd.f32 %v2269_v30, %v2949_v8  ;;  %v1263_v55 = vadd.f32 %v2339_v54, %v2967_v21  ;;  %v1254_v39 = vpop.f32.mrb[55].mxu1  ;;  %v2272_v4 = vadd.f32 %v2271_v3, %v2270_v32 }
 0x167   : > { %v1255_v40 = vadd.f32 %v1254_v39, %v2961_v1  ;;  %v1280_v41 = vmax.f32 %v1260_v29, 0.0  ;;  %v1278_v18 = vmax.f32 %v1252_v33, 0.0  ;;  %v2481_v1 = vld [vmem:[%s3116_s5 + $0x18] sm:$0xff]  }
 0x168   : > { %v1244_v42 = vadd.f32 %v2334_v7, %v1147_v38  ;;  %v1281_v43 = vmax.f32 %v1263_v55, 0.0  ;;  %2364 = vmatprep.mubr.bf16.mxu1 %v1286_v34  ;;  %v1150_v44 = vadd.f32 %v2272_v4, %v2951_v9  ;;  %2378 = vmatprep.subr.bf16.mxu0 %v2481_v1  ;;  %v1990_v9 = vld [vmem:[%s3115_s4] ss:$0 sm:$0xff] }
 0x169   : > { %v1279_v45 = vmax.f32 %v1255_v40, 0.0  ;;  %2379 = vmatpush3.bf16.msra.mxu0 %v2481_v1 }
 0x16a   : > { %v1289_v0 = vpack.c.bf16 %v1281_v43, %v1280_v41  ;;  %v1247_v46 = vadd.f32 %v2335_v15, %v1150_v44  ;;  %v1276_v48 = vmax.f32 %v1244_v42, 0.0 }
 0x16b   : > { %v1288_v47 = vpack.c.bf16 %v1279_v45, %v1278_v18 }
 0x16c   : > { %v1277_v49 = vmax.f32 %v1247_v46, 0.0 }
 0x16e   : > { %v1287_v8 = vpack.c.bf16 %v1277_v49, %v1276_v48 }
 0x170   : > { %2365 = vmatmul.mubr.bf16.gmra.mrb[64].mxu1 %v1287_v8 }
 0x171   : > { %2368 = vmatprep.mubr.bf16.mxu1 %v1288_v47 }
 0x178   : > { %2369 = vmatmul.mubr.bf16.gmra.mrb[68].mxu1 %v1289_v0  ;;  %v1999_v0 = vld [vmem:[%s3117_s6] ss:$0 sm:$0xff] }
 0x229   : > { %v2358_v21 = vpop.f32.mrb[56].mxu1 }
 0x22a   : > { %v1404_v50 = vadd.f32 %v2358_v21, %v1990_v9  ;;  %v1395_v53 = vpop.f32.mrb[57].mxu1 }
 0x22b   : > { %v1396_v56 = vadd.f32 %v1990_v9, %v1395_v53  ;;  %v2359_v57 = vpop.f32.mrb[58].mxu1 }
 0x22c   : > { %v1407_v19 = vadd.f32 %v2359_v57, %v1990_v9  ;;  %v1398_v58 = vpop.f32.mrb[59].mxu1  ;;  %v1460_v20 = vmax.f32 %v1404_v50, 0.0 }
 0x22d   : > { %v1399_v59 = vadd.f32 %v1990_v9, %v1398_v58  ;;  %v1458_v61 = vmax.f32 %v1396_v56, 0.0 }
 0x22e   : > { %v1461_v60 = vmax.f32 %v1407_v19, 0.0 }
 0x22f   : > { %v1459_v62 = vmax.f32 %v1399_v59, 0.0 }
 0x230   : > { %v1475_v63 = vpack.c.bf16 %v1461_v60, %v1460_v20 }
 0x231   : > { %v1474_v36 = vpack.c.bf16 %v1459_v62, %v1458_v61 }
 0x233   : > { %2380 = vmatprep.mubr.msk.bf16.mxu0 %vm1521_vm1, %v1474_v36  ;;  %v2362_v2 = vpop.f32.mrb[60].mxu1 }
 0x234   : > { %v1420_v5 = vadd.f32 %v2362_v2, %v1990_v9  ;;  %2381 = vmatmul.mubr.msk.bf16.vlgmr.msra.gmra.mrb[56].mxu0 %vm1521_vm1, %v1475_v63  ;;  %v1411_v6 = vpop.f32.mrb[61].mxu1 }
 0x235   : > { %v1412_v7 = vadd.f32 %v1990_v9, %v1411_v6  ;;  %v2363_v10 = vpop.f32.mrb[62].mxu1 }
 0x236   : > { %v1423_v11 = vadd.f32 %v2363_v10, %v1990_v9  ;;  %v1414_v12 = vpop.f32.mrb[63].mxu1  ;;  %v1464_v14 = vmax.f32 %v1420_v5, 0.0 }
 0x237   : > { %v1415_v13 = vadd.f32 %v1990_v9, %v1414_v12  ;;  %v1462_v15 = vmax.f32 %v1412_v7, 0.0 }
 0x238   : > { %v1465_v35 = vmax.f32 %v1423_v11, 0.0 }
 0x239   : > { %v1463_v16 = vmax.f32 %v1415_v13, 0.0 }
 0x23a   : > { %v1477_v51 = vpack.c.bf16 %v1465_v35, %v1464_v14 }
 0x23b   : > { %v1476_v17 = vpack.c.bf16 %v1463_v16, %v1462_v15 }
 0x23d   : > { %2384 = vmatprep.mubr.msk.bf16.mxu0 %vm1521_vm1, %v1476_v17 }
 0x23e   : > { %2385 = vmatmul.mubr.msk.bf16.gmra.mrb[60].mxu0 %vm1521_vm1, %v1477_v51 }
 0x243   : > { %v2366_v37 = vpop.f32.mrb[64].mxu1 }
 0x244   : > { %v1436_v52 = vadd.f32 %v2366_v37, %v1990_v9  ;;  %v1427_v22 = vpop.f32.mrb[65].mxu1 }
 0x245   : > { %v1428_v23 = vadd.f32 %v1990_v9, %v1427_v22  ;;  %v2367_v24 = vpop.f32.mrb[66].mxu1 }
 0x246   : > { %v1439_v25 = vadd.f32 %v2367_v24, %v1990_v9  ;;  %v1430_v26 = vpop.f32.mrb[67].mxu1  ;;  %v1468_v28 = vmax.f32 %v1436_v52, 0.0 }
 0x247   : > { %v1431_v27 = vadd.f32 %v1990_v9, %v1430_v26  ;;  %v1466_v30 = vmax.f32 %v1428_v23, 0.0 }
 0x248   : > { %v1469_v29 = vmax.f32 %v1439_v25, 0.0 }
 0x249   : > { %v1467_v31 = vmax.f32 %v1431_v27, 0.0 }
 0x24a   : > { %v1479_v32 = vpack.c.bf16 %v1469_v29, %v1468_v28 }
 0x24b   : > { %v1478_v33 = vpack.c.bf16 %v1467_v31, %v1466_v30  ;;  %v2370_v54 = vpop.f32.mrb[68].mxu1 }
 0x24c   : > { %v1452_v3 = vadd.f32 %v2370_v54, %v1990_v9  ;;  %v1443_v34 = vpop.f32.mrb[69].mxu1 }
 0x24d   : > { %v1444_v38 = vadd.f32 %v1990_v9, %v1443_v34  ;;  %v2371_v55 = vpop.f32.mrb[70].mxu1  ;;  %2388 = vmatprep.mubr.msk.bf16.mxu0 %vm1521_vm1, %v1478_v33 }
 0x24e   : > { %v1455_v39 = vadd.f32 %v2371_v55, %v1990_v9  ;;  %v1446_v4 = vpop.f32.mrb[71].mxu1  ;;  %2389 = vmatmul.mubr.msk.bf16.gmra.mrb[64].mxu0 %vm1521_vm1, %v1479_v32  ;;  %v1472_v41 = vmax.f32 %v1452_v3, 0.0 }
 0x24f   : > { %v1447_v40 = vadd.f32 %v1990_v9, %v1446_v4  ;;  %v1470_v43 = vmax.f32 %v1444_v38, 0.0 }
 0x250   : > { %v1473_v42 = vmax.f32 %v1455_v39, 0.0 }
 0x251   : > { %v1471_v18 = vmax.f32 %v1447_v40, 0.0 }
 0x252   : > { %v1481_v44 = vpack.c.bf16 %v1473_v42, %v1472_v41 }
 0x253   : > { %v1480_v45 = vpack.c.bf16 %v1471_v18, %v1470_v43 }
 0x255   : > { %2392 = vmatprep.mubr.msk.bf16.mxu0 %vm1521_vm1, %v1480_v45 }
 0x256   : > { %2393 = vmatmul.mubr.msk.bf16.gmra.mrb[68].mxu0 %vm1521_vm1, %v1481_v44 }
 0x307   : > { %v2382_v46 = vpop.f32.mrb[56].mxu0 }
 0x308   : > { %v1589_v47 = vadd.f32 %v2382_v46, %v1999_v0  ;;  %v1580_v48 = vpop.f32.mrb[57].mxu0 }
 0x309   : > { %v1581_v49 = vadd.f32 %v1999_v0, %v1580_v48  ;;  %v2383_v8 = vpop.f32.mrb[58].mxu0 }
 0x30a   : > { %1647 = vmax.xlane.f32.xlu1 %v1589_v47  ;;  %v1583_v1 = vpop.f32.mrb[59].mxu0  ;;  %v1592_v9 = vadd.f32 %v2383_v8, %v1999_v0 }
 0x30b   : > { %1643 = vmax.xlane.f32.xlu0 %v1581_v49  ;;  %v1584_v21 = vadd.f32 %v1999_v0, %v1583_v1 }
 0x30e   : > { %1649 = vmax.xlane.f32.xlu1 %v1592_v9 }
 0x30f   : > { %1645 = vmax.xlane.f32.xlu0 %v1584_v21 }
 0x311   : > { %v2386_v50 = vpop.f32.mrb[60].mxu0 }
 0x312   : > { %v1605_v53 = vadd.f32 %v2386_v50, %v1999_v0  ;;  %v1596_v56 = vpop.f32.mrb[61].mxu0 }
 0x313   : > { %v2387_v57 = vpop.f32.mrb[62].mxu0  ;;  %v1597_v59 = vadd.f32 %v1999_v0, %v1596_v56 }
 0x314   : > { %v1608_v19 = vadd.f32 %v2387_v57, %v1999_v0  ;;  %v1599_v58 = vpop.f32.mrb[63].mxu0  ;;  %1655 = vmax.xlane.f32.xlu0 %v1605_v53 }
 0x315   : > { %v1600_v20 = vadd.f32 %v1999_v0, %v1599_v58 }
 0x316   : > { %1657 = vmax.xlane.f32.xlu1 %v1608_v19 }
 0x318   : > { %1651 = vmax.xlane.f32.xlu0 %v1597_v59 }
 0x31a   : > { %1653 = vmax.xlane.f32.xlu1 %v1600_v20 }
 0x321   : > { %v2390_v60 = vpop.f32.mrb[64].mxu0 }
 0x322   : > { %v2998_v61 = vadd.f32 %v2390_v60, %v1999_v0  ;;  %v1612_v62 = vpop.f32.mrb[65].mxu0 }
 0x323   : > { %v2391_v63 = vpop.f32.mrb[66].mxu0  ;;  %v3003_v5 = vadd.f32 %v1999_v0, %v1612_v62 }
 0x324   : > { %v3000_v36 = vadd.f32 %v2391_v63, %v1999_v0  ;;  %v1615_v2 = vpop.f32.mrb[67].mxu0  ;;  %1663 = vmax.xlane.f32.xlu0 %v2998_v61 }
 0x325   : > { %v3006_v6 = vadd.f32 %v1999_v0, %v1615_v2 }
 0x326   : > { %1665 = vmax.xlane.f32.xlu1 %v3000_v36 }
 0x328   : > { %1659 = vmax.xlane.f32.xlu0 %v3003_v5 }
 0x329   : > { %v2394_v7 = vpop.f32.mrb[68].mxu0 }
 0x32a   : > { %v1628_v10 = vpop.f32.mrb[69].mxu0  ;;  %1661 = vmax.xlane.f32.xlu1 %v3006_v6  ;;  %v3015_v35 = vadd.f32 %v2394_v7, %v1999_v0 }
 0x32b   : > { %v3010_v11 = vadd.f32 %v1999_v0, %v1628_v10  ;;  %v2395_v12 = vpop.f32.mrb[70].mxu0 }
 0x32c   : > { %v1631_v13 = vpop.f32.mrb[71].mxu0  ;;  %v3018_v15 = vadd.f32 %v2395_v12, %v1999_v0 }
 0x32d   : > { %v3012_v14 = vadd.f32 %v1999_v0, %v1631_v13  ;;  %1667 = vmax.xlane.f32.xlu0 %v3010_v11 }
 0x32f   : > { %1669 = vmax.xlane.f32.xlu1 %v3012_v14 }
 0x331   : > { %1671 = vmax.xlane.f32.xlu0 %v3015_v35 }
 0x333   : > { %1673 = vmax.xlane.f32.xlu1 %v3018_v15 }
 0x397   : > { %v1648_v16 = vpop.xlane.xlu1 %1647 }
 0x398   : > { %v1677_v51 = vsub.f32 %v1589_v47, %v1648_v16  ;;  %v1644_v17 = vpop.xlane.xlu0 %1643 }
 0x399   : > { %v1675_v37 = vsub.f32 %v1581_v49, %v1644_v17 }
 0x39a   : > { %v1695_v52 = vmul.f32 1.442695, %v1677_v51 }
 0x39b   : > { %v1691_v22 = vmul.f32 1.442695, %v1675_v37  ;;  %v1650_v23 = vpop.xlane.xlu1 %1649 }
 0x39c   : > { %2482 = vpow2.f32 %v1695_v52  ;;  %v1678_v24 = vsub.f32 %v1592_v9, %v1650_v23  ;;  %v1646_v25 = vpop.xlane.xlu0 %1645 }
 0x39d   : > { %v1676_v26 = vsub.f32 %v1584_v21, %v1646_v25  ;;  %2484 = vpow2.f32 %v1691_v22 }
 0x39e   : > { %v1697_v27 = vmul.f32 1.442695, %v1678_v24 }
 0x39f   : > { %v1693_v28 = vmul.f32 1.442695, %v1676_v26 }
 0x3a0   : > { %2486 = vpow2.f32 %v1697_v27 }
 0x3a1   : > { %v1656_v29 = vpop.xlane.xlu0 %1655  ;;  %2488 = vpow2.f32 %v1693_v28 }
 0x3a2   : > { %v1681_v30 = vsub.f32 %v1605_v53, %v1656_v29 }
 0x3a3   : > { %v1658_v31 = vpop.xlane.xlu1 %1657 }
 0x3a4   : > { %v1703_v32 = vmul.f32 1.442695, %v1681_v30  ;;  %v1682_v33 = vsub.f32 %v1608_v19, %v1658_v31 }
 0x3a5   : > { %v1652_v54 = vpop.xlane.xlu0 %1651 }
 0x3a6   : > { %v3022_v3 = vpop.eup %2482  ;;  %2490 = vpow2.f32 %v1703_v32  ;;  %v1705_v34 = vmul.f32 1.442695, %v1682_v33  ;;  %v1679_v38 = vsub.f32 %v1597_v59, %v1652_v54 }
 0x3a7   : > { %1727 = vadd.xlane.f32.xlu0 %v3022_v3  ;;  %v1654_v55 = vpop.xlane.xlu1 %1653  ;;  %v3025_v40 = vpop.eup %2484 }
 0x3a8   : > { %2492 = vpow2.f32 %v1705_v34  ;;  %v1699_v39 = vmul.f32 1.442695, %v1679_v38  ;;  %v1680_v4 = vsub.f32 %v1600_v20, %v1654_v55 }
 0x3aa   : > { %v3027_v41 = vpop.eup %2486  ;;  %2494 = vpow2.f32 %v1699_v39  ;;  %v1701_v42 = vmul.f32 1.442695, %v1680_v4 }
 0x3ab   : > { %1729 = vadd.xlane.f32.xlu1 %v3027_v41  ;;  %1723 = vadd.xlane.f32.xlu0 %v3025_v40  ;;  %v3031_v43 = vpop.eup %2488 }
 0x3ac   : > { %2496 = vpow2.f32 %v1701_v42 }
 0x3af   : > { %1725 = vadd.xlane.f32.xlu1 %v3031_v43 }
 0x3b0   : > { %v3034_v18 = vpop.eup %2490 }
 0x3b1   : > { %1735 = vadd.xlane.f32.xlu0 %v3034_v18  ;;  %v1664_v45 = vpop.xlane.xlu0 %1663 }
 0x3b2   : > { %v3037_v44 = vpop.eup %2492  ;;  %v1685_v0 = vsub.f32 %v2998_v61, %v1664_v45 }
 0x3b3   : > { %1737 = vadd.xlane.f32.xlu1 %v3037_v44  ;;  %v1666_v47 = vpop.xlane.xlu1 %1665 }
 0x3b4   : > { %v3041_v46 = vpop.eup %2494  ;;  %v1711_v48 = vmul.f32 1.442695, %v1685_v0  ;;  %v1686_v49 = vsub.f32 %v3000_v36, %v1666_v47 }
 0x3b5   : > { %1731 = vadd.xlane.f32.xlu0 %v3041_v46  ;;  %v1660_v1 = vpop.xlane.xlu0 %1659 }
 0x3b6   : > { %v3045_v8 = vpop.eup %2496  ;;  %2498 = vpow2.f32 %v1711_v48  ;;  %v1713_v9 = vmul.f32 1.442695, %v1686_v49  ;;  %v1683_v21 = vsub.f32 %v3003_v5, %v1660_v1 }
 0x3b7   : > { %1733 = vadd.xlane.f32.xlu1 %v3045_v8  ;;  %v1662_v50 = vpop.xlane.xlu1 %1661 }
 0x3b8   : > { %2500 = vpow2.f32 %v1713_v9  ;;  %v1707_v53 = vmul.f32 1.442695, %v1683_v21  ;;  %v1684_v56 = vsub.f32 %v3006_v6, %v1662_v50 }
 0x3ba   : > { %2502 = vpow2.f32 %v1707_v53  ;;  %v1709_v57 = vmul.f32 1.442695, %v1684_v56  ;;  %v1668_v19 = vpop.xlane.xlu0 %1667 }
 0x3bb   : > { %v1687_v58 = vsub.f32 %v3010_v11, %v1668_v19 }
 0x3bc   : > { %2504 = vpow2.f32 %v1709_v57  ;;  %v1670_v59 = vpop.xlane.xlu1 %1669 }
 0x3bd   : > { %v1715_v20 = vmul.f32 1.442695, %v1687_v58  ;;  %v1688_v60 = vsub.f32 %v3012_v14, %v1670_v59 }
 0x3be   : > { %v1672_v61 = vpop.xlane.xlu0 %1671 }
 0x3bf   : > { %2506 = vpow2.f32 %v1715_v20  ;;  %v1717_v62 = vmul.f32 1.442695, %v1688_v60  ;;  %v1689_v63 = vsub.f32 %v3015_v35, %v1672_v61 }
 0x3c0   : > { %v3053_v36 = vpop.eup %2498  ;;  %v1674_v2 = vpop.xlane.xlu1 %1673 }
 0x3c1   : > { %2508 = vpow2.f32 %v1717_v62  ;;  %v1719_v5 = vmul.f32 1.442695, %v1689_v63  ;;  %v1690_v6 = vsub.f32 %v3018_v15, %v1674_v2  ;;  %1743 = vadd.xlane.f32.xlu0 %v3053_v36 }
 0x3c2   : > { %v3057_v7 = vpop.eup %2500 }
 0x3c3   : > { %2510 = vpow2.f32 %v1719_v5  ;;  %v1721_v10 = vmul.f32 1.442695, %v1690_v6  ;;  %1745 = vadd.xlane.f32.xlu1 %v3057_v7 }
 0x3c4   : > { %v3060_v11 = vpop.eup %2502 }
 0x3c5   : > { %2512 = vpow2.f32 %v1721_v10  ;;  %1739 = vadd.xlane.f32.xlu0 %v3060_v11 }
 0x3c6   : > { %v3063_v12 = vpop.eup %2504 }
 0x3c7   : > { %1741 = vadd.xlane.f32.xlu1 %v3063_v12 }
 0x3c9   : > { %v3066_v13 = vpop.eup %2506 }
 0x3ca   : > { %1747 = vadd.xlane.f32.xlu0 %v3066_v13 }
 0x3cb   : > { %v3069_v14 = vpop.eup %2508 }
 0x3cc   : > { %1749 = vadd.xlane.f32.xlu1 %v3069_v14 }
 0x3cd   : > { %v3072_v35 = vpop.eup %2510 }
 0x3ce   : > { %1751 = vadd.xlane.f32.xlu0 %v3072_v35 }
 0x3cf   : > { %v3075_v15 = vpop.eup %2512 }
 0x3d0   : > { %1753 = vadd.xlane.f32.xlu1 %v3075_v15 }
 0x434   : > { %v1728_v16 = vpop.xlane.xlu0 %1727 }
 0x435   : > { %2514 = vrcp.f32 %v1728_v16 }
 0x438   : > { %v1730_v51 = vpop.xlane.xlu1 %1729  ;;  %v1724_v17 = vpop.xlane.xlu0 %1723 }
 0x439   : > { %2516 = vrcp.f32 %v1730_v51 }
 0x43a   : > { %2518 = vrcp.f32 %v1724_v17 }
 0x43c   : > { %v1726_v37 = vpop.xlane.xlu1 %1725 }
 0x43d   : > { %2520 = vrcp.f32 %v1726_v37 }
 0x43e   : > { %v1736_v52 = vpop.xlane.xlu0 %1735 }
 0x43f   : > { %2522 = vrcp.f32 %v1736_v52  ;;  %v2515_v23 = vpop.eup %2514 }
 0x440   : > { %v1738_v22 = vpop.xlane.xlu1 %1737  ;;  %v1773_v26 = vmul.f32 %v2515_v23, %v3022_v3 }
 0x441   : > { %2524 = vrcp.f32 %v1738_v22 }
 0x442   : > { %v1732_v24 = vpop.xlane.xlu0 %1731 }
 0x443   : > { %v2517_v25 = vpop.eup %2516  ;;  %2526 = vrcp.f32 %v1732_v24 }
 0x444   : > { %v1774_v27 = vmul.f32 %v2517_v25, %v3027_v41  ;;  %v1734_v28 = vpop.xlane.xlu1 %1733  ;;  %v2519_v29 = vpop.eup %2518 }
 0x445   : > { %2528 = vrcp.f32 %v1734_v28  ;;  %v1771_v32 = vmul.f32 %v2519_v29, %v3025_v40 }
 0x446   : > { %v2054_v30 = vpack.c.bf16 %v1774_v27, %v1773_v26 }
 0x447   : > { %v2521_v31 = vpop.eup %2520 }
 0x448   : > { %2086 = vst [vmem:[%s3084_s14 + $0x8] sm:$0xff] %v2054_v30   ;;  %v1772_v33 = vmul.f32 %v2521_v31, %v3031_v43 }
 0x449   : > { %v2523_v54 = vpop.eup %2522 }
 0x44a   : > { %v2049_v3 = vpack.c.bf16 %v1772_v33, %v1771_v32  ;;  %v1777_v38 = vmul.f32 %v2523_v54, %v3034_v18 }
 0x44b   : > { %v2525_v34 = vpop.eup %2524 }
 0x44c   : > { %2050 = vst [vmem:[%s3084_s14] sm:$0xff] %v2049_v3   ;;  %v1778_v55 = vmul.f32 %v2525_v34, %v3037_v44 }
 0x44d   : > { %v2527_v39 = vpop.eup %2526 }
 0x44e   : > { %v2064_v4 = vpack.c.bf16 %v1778_v55, %v1777_v38  ;;  %v1744_v42 = vpop.xlane.xlu0 %1743  ;;  %v1775_v45 = vmul.f32 %v2527_v39, %v3041_v46 }
 0x44f   : > { %v2529_v41 = vpop.eup %2528  ;;  %2530 = vrcp.f32 %v1744_v42 }
 0x450   : > { %2088 = vst [vmem:[%s3084_s14 + $0x18] sm:$0xff] %v2064_v4   ;;  %v1776_v40 = vmul.f32 %v2529_v41, %v3045_v8  ;;  %v1746_v43 = vpop.xlane.xlu1 %1745 }
 0x451   : > { %2532 = vrcp.f32 %v1746_v43 }
 0x452   : > { %v2059_v0 = vpack.c.bf16 %v1776_v40, %v1775_v45  ;;  %v1740_v47 = vpop.xlane.xlu0 %1739 }
 0x453   : > { %2534 = vrcp.f32 %v1740_v47 }
 0x454   : > { %2087 = vst [vmem:[%s3084_s14 + $0x10] sm:$0xff] %v2059_v0   ;;  %v1742_v48 = vpop.xlane.xlu1 %1741 }
 0x455   : > { %2536 = vrcp.f32 %v1742_v48 }
 0x457   : > { %v1748_v18 = vpop.xlane.xlu0 %1747 }
 0x458   : > { %2538 = vrcp.f32 %v1748_v18 }
 0x459   : > { %v2531_v44 = vpop.eup %2530  ;;  %v1750_v49 = vpop.xlane.xlu1 %1749 }
 0x45a   : > { %2540 = vrcp.f32 %v1750_v49  ;;  %v1781_v8 = vmul.f32 %v2531_v44, %v3053_v36 }
 0x45b   : > { %v2533_v1 = vpop.eup %2532  ;;  %v1752_v46 = vpop.xlane.xlu0 %1751 }
 0x45c   : > { %v1782_v9 = vmul.f32 %v2533_v1, %v3057_v7  ;;  %2542 = vrcp.f32 %v1752_v46 }
 0x45d   : > { %v2535_v21 = vpop.eup %2534  ;;  %v1754_v50 = vpop.xlane.xlu1 %1753 }
 0x45e   : > { %v2074_v53 = vpack.c.bf16 %v1782_v9, %v1781_v8  ;;  %2544 = vrcp.f32 %v1754_v50  ;;  %v1779_v57 = vmul.f32 %v2535_v21, %v3060_v11 }
 0x45f   : > { %v2537_v56 = vpop.eup %2536 }
 0x460   : > { %2090 = vst [vmem:[%s3084_s14 + $0x28] sm:$0xff] %v2074_v53   ;;  %v1780_v19 = vmul.f32 %v2537_v56, %v3063_v12 }
 0x462   : > { %v2539_v58 = vpop.eup %2538  ;;  %v2069_v59 = vpack.c.bf16 %v1780_v19, %v1779_v57 }
 0x463   : > { %v1783_v60 = vmul.f32 %v2539_v58, %v3066_v13 }
 0x464   : > { %v2541_v20 = vpop.eup %2540  ;;  %2089 = vst [vmem:[%s3084_s14 + $0x20] sm:$0xff] %v2069_v59  }
 0x465   : > { %v1784_v61 = vmul.f32 %v2541_v20, %v3069_v14 }
 0x466   : > { %v2543_v62 = vpop.eup %2542 }
 0x467   : > { %v2079_v63 = vpack.c.bf16 %v1784_v61, %v1783_v60  ;;  %v1785_v2 = vmul.f32 %v2543_v62, %v3072_v35 }
 0x468   : > { %v2545_v36 = vpop.eup %2544 }
 0x469   : > { %2091 = vst [vmem:[%s3084_s14 + $0x30] sm:$0xff] %v2079_v63   ;;  %v1786_v5 = vmul.f32 %v2545_v36, %v3075_v15 }
 0x46b   : > { %v2084_v6 = vpack.c.bf16 %v1786_v5, %v1785_v2 }
 0x46d   : > { %2092 = vst [vmem:[%s3084_s14 + $0x38] sm:$0xff] %v2084_v6  }
 0x46e PF: > { %s17_s24 = sadd.s32 1, %s2552_s24  }
 0x46f   : > { %p14_p4 = scmp.ge.s32.totalorder %s17_s24, 4  }
 0x471   :  { %16 = sbr.rel (!%p14_p4) target bundleno = 1 (0x1), region = 78 }

</bundles_post_ra>
